<compile_context>
chip_gen: v5e
topology: v5e:2x2
jax: 0.10.0
libtpu: 0.0.40
codegen_flags: <defaults>
</compile_context>

<pallas_src>
import math

import jax
import jax.numpy as jnp
from jax.experimental import pallas as pl
from jax.experimental.pallas import tpu as pltpu

# ----------------------------- config -----------------------------
B = 2            # batch
S = 8            # sequence length
H = 32           # hidden size   (768 in bert-base)
NH = 2           # attention heads
DH = H // NH     # head dim
I = 64           # intermediate (FFN) size
L = 2            # encoder layers
VOCAB = 50
TYPE_VOCAB = 2
MAX_POS = 16
NUM_LABELS = 2
NUM_LABELS_PAD = 128          # lane-dense output slab; sliced to NUM_LABELS in the wrapper
LN_EPS = 1e-12
ATTN_SCALE = 1.0 / math.sqrt(DH)
GELU_C = math.sqrt(2.0 / math.pi)


# ----------------------------- fused forward kernel -----------------------------
def _bert_forward_kernel(
        emb_ref, maskb_ref, emb_g_ref, emb_b_ref,
        wq_ref, bq_ref, wk_ref, bk_ref, wv_ref, bv_ref,
        wo_ref, bo_ref, ln1g_ref, ln1b_ref,
        wi_ref, bi_ref, wf_ref, bf_ref, ln2g_ref, ln2b_ref,
        poolw_ref, poolb_ref, clsw_ref, clsb_ref,
        out_ref):
    """Entire BERTClass forward (eval mode), fully resident in VMEM, single launch."""

    def layer_norm(x, g, b):
        mu = jnp.mean(x, axis=-1, keepdims=True)
        var = jnp.mean((x - mu) ** 2, axis=-1, keepdims=True)
        return (x - mu) * jax.lax.rsqrt(var + LN_EPS) * g + b

    def dense(x, w_bf16, b_f32):
        # bf16 operands on the MXU, f32 accumulation; elementwise stays f32.
        return jnp.dot(x.astype(jnp.bfloat16), w_bf16,
                       preferred_element_type=jnp.float32) + b_f32

    # embeddings -> LayerNorm (no residual)
    h = layer_norm(emb_ref[...], emb_g_ref[...], emb_b_ref[...])          # (B*S, H) f32
    mask_bias = maskb_ref[...]                                            # (B*NH, 1, S) f32

    for l in range(L):
        # ---------------- self-attention (batched over batch*heads) ----------------
        # (B*NH, S, H): each batch's rows replicated per head (tiny, aligned row slices only)
        h_n = jnp.stack([h[b * S:(b + 1) * S, :]
                         for b in range(B) for _ in range(NH)]).astype(jnp.bfloat16)

        q = jnp.einsum("nsh,nhd->nsd", h_n, wq_ref[l],
                       preferred_element_type=jnp.float32) + bq_ref[l]
        k = jnp.einsum("nsh,nhd->nsd", h_n, wk_ref[l],
                       preferred_element_type=jnp.float32) + bk_ref[l]
        v = jnp.einsum("nsh,nhd->nsd", h_n, wv_ref[l],
                       preferred_element_type=jnp.float32) + bv_ref[l]

        s = jnp.einsum("nqd,nkd->nqk", q.astype(jnp.bfloat16), k.astype(jnp.bfloat16),
                       preferred_element_type=jnp.float32) * ATTN_SCALE
        s = s + mask_bias
        s = s - jnp.max(s, axis=-1, keepdims=True)
        p = jnp.exp(s)
        p = p * pl.reciprocal(jnp.sum(p, axis=-1, keepdims=True), approx=True)
        ctx = jnp.einsum("nqk,nkd->nqd", p.astype(jnp.bfloat16), v.astype(jnp.bfloat16),
                         preferred_element_type=jnp.float32)              # (B*NH, S, DH)

        # output projection: per-head slabs pre-packed in wo_ref, summed over heads,
        # batches restacked as rows (all leading-dim ops, no lane re-interleave)
        proj = jnp.einsum("nsd,ndh->nsh", ctx.astype(jnp.bfloat16), wo_ref[l],
                          preferred_element_type=jnp.float32)             # (B*NH, S, H)
        rows = []
        for b in range(B):
            acc = proj[b * NH]
            for hd in range(1, NH):
                acc = acc + proj[b * NH + hd]
            rows.append(acc)
        attn = jnp.concatenate(rows, axis=0) + bo_ref[l]                  # (B*S, H)
        h = layer_norm(attn + h, ln1g_ref[l], ln1b_ref[l])                # post-LN, BERT style

        # ---------------- feed-forward ----------------
        inter = dense(h, wi_ref[l], bi_ref[l])                            # (B*S, I)
        # tanh-approx GELU (HF default is erf GELU; tiny numeric delta)
        inter = 0.5 * inter * (1.0 + jnp.tanh(
            GELU_C * (inter + 0.044715 * inter * inter * inter)))
        ffn = dense(inter, wf_ref[l], bf_ref[l])
        h = layer_norm(ffn + h, ln2g_ref[l], ln2b_ref[l])

    # ---------------- pooler -> dropout(identity) -> classifier ----------------
    # Computed for every token row (negligible extra work at this size) so the kernel's only
    # HBM store is a fully (8,128)-aligned lane-dense slab; the wrapper picks the CLS row.
    pooled = jnp.tanh(dense(h, poolw_ref[...], poolb_ref[...]))           # (B*S, H)
    # l2 = Dropout(0.3): eval-mode identity (deterministic inference).
    # TODO(synk): training-mode dropout via pltpu.prng_seed / pltpu.stateful_bernoulli if needed.
    logits = dense(pooled, clsw_ref[...], clsb_ref[...])                  # (B*S, 128)
    out_ref[...] = logits.astype(out_ref.dtype)


# ----------------------------- parameters -----------------------------
def init_params(key):
    keys = iter(jax.random.split(key, 32))

    def nrm(shape):
        return 0.02 * jax.random.normal(next(keys), shape, dtype=jnp.float32)

    f32, bf16 = jnp.float32, jnp.bfloat16

    def tile_heads(x):          # (NH, ...) -> (B*NH, ...), replicated per batch element
        return jnp.tile(x, (B,) + (1,) * (x.ndim - 1))

    layers = []
    for _ in range(L):
        wq, wk, wv, wo = nrm((H, H)), nrm((H, H)), nrm((H, H)), nrm((H, H))
        layers.append(dict(
            # attention weights pre-split per head + pre-tiled over batch so the kernel runs
            # pure batched matmuls (no in-kernel transpose / lane-unaligned slicing)
            wq=tile_heads(wq.reshape(H, NH, DH).transpose(1, 0, 2)).astype(bf16),
            wk=tile_heads(wk.reshape(H, NH, DH).transpose(1, 0, 2)).astype(bf16),
            wv=tile_heads(wv.reshape(H, NH, DH).transpose(1, 0, 2)).astype(bf16),
            bq=tile_heads(jnp.zeros((NH, 1, DH), f32)),
            bk=tile_heads(jnp.zeros((NH, 1, DH), f32)),
            bv=tile_heads(jnp.zeros((NH, 1, DH), f32)),
            wo=tile_heads(wo.reshape(NH, DH, H)).astype(bf16),
            bo=jnp.zeros((1, H), f32),
            ln1_g=jnp.ones((1, H), f32), ln1_b=jnp.zeros((1, H), f32),
            wi=nrm((H, I)).astype(bf16), bi=jnp.zeros((1, I), f32),
            wf=nrm((I, H)).astype(bf16), bf=jnp.zeros((1, H), f32),
            ln2_g=jnp.ones((1, H), f32), ln2_b=jnp.zeros((1, H), f32),
        ))
    stacked = {k: jnp.stack([lyr[k] for lyr in layers]) for k in layers[0]}

    cls_w = nrm((H, NUM_LABELS))   # the l3 = Linear(hidden, 2) head, padded lane-dense to 128
    params = dict(
        word_emb=nrm((VOCAB, H)),
        pos_emb=nrm((MAX_POS, H)),
        type_emb=nrm((TYPE_VOCAB, H)),
        emb_ln_g=jnp.ones((1, H), f32), emb_ln_b=jnp.zeros((1, H), f32),
        pool_w=nrm((H, H)).astype(bf16), pool_b=jnp.zeros((1, H), f32),
        cls_w_pad=jnp.pad(cls_w, ((0, 0), (0, NUM_LABELS_PAD - NUM_LABELS))).astype(bf16),
        cls_b_pad=jnp.zeros((1, NUM_LABELS_PAD), f32),
        **{"l_" + k: v for k, v in stacked.items()},
    )
    return params


# ----------------------------- forward pass -----------------------------
def bert_class_forward(params, input_ids, token_type_ids, attention_mask):
    Bx, Sx = input_ids.shape
    pos_ids = jnp.arange(Sx)

    # embedding gathers are XLA glue; everything downstream is ONE fused Pallas kernel
    emb = (jnp.take(params["word_emb"], input_ids, axis=0)
           + jnp.take(params["pos_emb"], pos_ids, axis=0)[None, :, :]
           + jnp.take(params["type_emb"], token_type_ids, axis=0))
    emb = emb.reshape(Bx * Sx, H).astype(jnp.float32)

    # additive attention-mask bias, pre-expanded to (B*NH, 1, S) so the kernel never reshapes it
    mask_bias = (1.0 - attention_mask.astype(jnp.float32)) * -1e4
    mask_bias = jnp.repeat(mask_bias, NH, axis=0)[:, None, :]

    args = (emb, mask_bias, params["emb_ln_g"], params["emb_ln_b"],
            params["l_wq"], params["l_bq"], params["l_wk"], params["l_bk"],
            params["l_wv"], params["l_bv"], params["l_wo"], params["l_bo"],
            params["l_ln1_g"], params["l_ln1_b"],
            params["l_wi"], params["l_bi"], params["l_wf"], params["l_bf"],
            params["l_ln2_g"], params["l_ln2_b"],
            params["pool_w"], params["pool_b"],
            params["cls_w_pad"], params["cls_b_pad"])

    vmem = pl.BlockSpec(memory_space=pltpu.MemorySpace.VMEM)
    logits_pad = pl.pallas_call(
        _bert_forward_kernel,
        out_shape=jax.ShapeDtypeStruct((Bx * Sx, NUM_LABELS_PAD), jnp.float32),
        in_specs=[vmem] * len(args),
        out_specs=vmem,
    )(*args)

    # select the CLS-token row and the real 2-class columns from the lane-dense padded slab
    return logits_pad.reshape(Bx, Sx, NUM_LABELS_PAD)[:, 0, :NUM_LABELS]


# ----------------------------- main -----------------------------
if __name__ == "__main__":
    key = jax.random.PRNGKey(0)
    k_ids, k_params = jax.random.split(key)

    input_ids = jax.random.randint(k_ids, (B, S), 0, VOCAB, dtype=jnp.int32)
    token_type_ids = jnp.concatenate(
        [jnp.zeros((B, S // 2), jnp.int32), jnp.ones((B, S // 2), jnp.int32)], axis=1)
    attention_mask = jnp.array(
        [[1] * S,
         [1] * (S - 3) + [0] * 3], dtype=jnp.float32)

    params = init_params(k_params)

    logits = jax.jit(bert_class_forward)(params, input_ids, token_type_ids, attention_mask)
    jax.block_until_ready(logits)
    assert logits.shape == (B, NUM_LABELS)
    print("KERNEL_OK")
</pallas_src>

<mosaic_0001>
module attributes {stable_mosaic.version = 11 : i64} {
  func.func @_bert_forward_kernel(%arg0: memref<16x32xf32, #tpu.memory_space<vmem>>, %arg1: memref<4x1x8xf32, #tpu.memory_space<vmem>>, %arg2: memref<1x32xf32, #tpu.memory_space<vmem>>, %arg3: memref<1x32xf32, #tpu.memory_space<vmem>>, %arg4: memref<2x4x32x16xbf16, #tpu.memory_space<vmem>>, %arg5: memref<2x4x1x16xf32, #tpu.memory_space<vmem>>, %arg6: memref<2x4x32x16xbf16, #tpu.memory_space<vmem>>, %arg7: memref<2x4x1x16xf32, #tpu.memory_space<vmem>>, %arg8: memref<2x4x32x16xbf16, #tpu.memory_space<vmem>>, %arg9: memref<2x4x1x16xf32, #tpu.memory_space<vmem>>, %arg10: memref<2x4x16x32xbf16, #tpu.memory_space<vmem>>, %arg11: memref<2x1x32xf32, #tpu.memory_space<vmem>>, %arg12: memref<2x1x32xf32, #tpu.memory_space<vmem>>, %arg13: memref<2x1x32xf32, #tpu.memory_space<vmem>>, %arg14: memref<2x32x64xbf16, #tpu.memory_space<vmem>>, %arg15: memref<2x1x64xf32, #tpu.memory_space<vmem>>, %arg16: memref<2x64x32xbf16, #tpu.memory_space<vmem>>, %arg17: memref<2x1x32xf32, #tpu.memory_space<vmem>>, %arg18: memref<2x1x32xf32, #tpu.memory_space<vmem>>, %arg19: memref<2x1x32xf32, #tpu.memory_space<vmem>>, %arg20: memref<32x32xbf16, #tpu.memory_space<vmem>>, %arg21: memref<1x32xf32, #tpu.memory_space<vmem>>, %arg22: memref<32x128xbf16, #tpu.memory_space<vmem>>, %arg23: memref<1x128xf32, #tpu.memory_space<vmem>>, %arg24: memref<16x128xf32, #tpu.memory_space<vmem>>) attributes {dimension_semantics = [], scalar_prefetch = 0 : i64, scratch_operands = 0 : i64, tpu.core_type = #tpu.core_type<tc>} {
    %c0 = arith.constant 0 : index
    %c0_0 = arith.constant 0 : index
    %0 = vector.load %arg0[%c0, %c0_0] : memref<16x32xf32, #tpu.memory_space<vmem>>, vector<16x32xf32>
    %c0_1 = arith.constant 0 : index
    %c0_2 = arith.constant 0 : index
    %1 = vector.load %arg2[%c0_1, %c0_2] : memref<1x32xf32, #tpu.memory_space<vmem>>, vector<1x32xf32>
    %c0_3 = arith.constant 0 : index
    %c0_4 = arith.constant 0 : index
    %2 = vector.load %arg3[%c0_3, %c0_4] : memref<1x32xf32, #tpu.memory_space<vmem>>, vector<1x32xf32>
    %cst = arith.constant dense<0.000000e+00> : vector<16xf32>
    %3 = vector.multi_reduction <add>, %0, %cst [1] : vector<16x32xf32> to vector<16xf32>
    %4 = vector.shape_cast %3 : vector<16xf32> to vector<16x1xf32>
    %cst_5 = arith.constant 3.200000e+01 : f32
    %5 = vector.broadcast %cst_5 : f32 to vector<16x1xf32>
    %6 = arith.divf %4, %5 : vector<16x1xf32>
    %7 = vector.broadcast %6 : vector<16x1xf32> to vector<16x32xf32>
    %8 = arith.subf %0, %7 : vector<16x32xf32>
    %9 = arith.mulf %8, %8 : vector<16x32xf32>
    %cst_6 = arith.constant dense<0.000000e+00> : vector<16xf32>
    %10 = vector.multi_reduction <add>, %9, %cst_6 [1] : vector<16x32xf32> to vector<16xf32>
    %11 = vector.shape_cast %10 : vector<16xf32> to vector<16x1xf32>
    %cst_7 = arith.constant 3.200000e+01 : f32
    %12 = vector.broadcast %cst_7 : f32 to vector<16x1xf32>
    %13 = arith.divf %11, %12 : vector<16x1xf32>
    %14 = vector.broadcast %6 : vector<16x1xf32> to vector<16x32xf32>
    %15 = arith.subf %0, %14 : vector<16x32xf32>
    %cst_8 = arith.constant 9.99999996E-13 : f32
    %16 = vector.broadcast %cst_8 : f32 to vector<16x1xf32>
    %17 = arith.addf %13, %16 : vector<16x1xf32>
    %18 = math.rsqrt %17 : vector<16x1xf32>
    %19 = vector.broadcast %18 : vector<16x1xf32> to vector<16x32xf32>
    %20 = arith.mulf %15, %19 : vector<16x32xf32>
    %21 = vector.broadcast %1 : vector<1x32xf32> to vector<16x32xf32>
    %22 = arith.mulf %20, %21 : vector<16x32xf32>
    %23 = vector.broadcast %2 : vector<1x32xf32> to vector<16x32xf32>
    %24 = arith.addf %22, %23 : vector<16x32xf32>
    %c0_9 = arith.constant 0 : index
    %c0_10 = arith.constant 0 : index
    %c0_11 = arith.constant 0 : index
    %25 = vector.load %arg1[%c0_9, %c0_10, %c0_11] : memref<4x1x8xf32, #tpu.memory_space<vmem>>, vector<4x1x8xf32>
    %26 = vector.extract_strided_slice %24 {offsets = [0, 0], sizes = [8, 32], strides = [1, 1]} : vector<16x32xf32> to vector<8x32xf32>
    %27 = vector.extract_strided_slice %24 {offsets = [0, 0], sizes = [8, 32], strides = [1, 1]} : vector<16x32xf32> to vector<8x32xf32>
    %28 = vector.extract_strided_slice %24 {offsets = [8, 0], sizes = [8, 32], strides = [1, 1]} : vector<16x32xf32> to vector<8x32xf32>
    %29 = vector.extract_strided_slice %24 {offsets = [8, 0], sizes = [8, 32], strides = [1, 1]} : vector<16x32xf32> to vector<8x32xf32>
    %30 = vector.shape_cast %26 : vector<8x32xf32> to vector<1x8x32xf32>
    %31 = vector.shape_cast %27 : vector<8x32xf32> to vector<1x8x32xf32>
    %32 = vector.shape_cast %28 : vector<8x32xf32> to vector<1x8x32xf32>
    %33 = vector.shape_cast %29 : vector<8x32xf32> to vector<1x8x32xf32>
    %34 = tpu.concatenate %30, %31, %32, %33 in 0 : vector<1x8x32xf32>, vector<1x8x32xf32>, vector<1x8x32xf32>, vector<1x8x32xf32> -> vector<4x8x32xf32>
    %35 = arith.truncf %34 : vector<4x8x32xf32> to vector<4x8x32xbf16>
    %c0_12 = arith.constant 0 : index
    %c0_13 = arith.constant 0 : index
    %c0_14 = arith.constant 0 : index
    %c0_15 = arith.constant 0 : index
    %36 = vector.load %arg4[%c0_12, %c0_13, %c0_14, %c0_15] : memref<2x4x32x16xbf16, #tpu.memory_space<vmem>>, vector<1x4x32x16xbf16>
    %37 = vector.shape_cast %36 : vector<1x4x32x16xbf16> to vector<4x32x16xbf16>
    "tpu.trace_start"() <{level = 10 : i32, message = "nsh,nhd->nsd"}> : () -> ()
    %cst_16 = arith.constant dense<0.000000e+00> : vector<4x8x16xf32>
    %38 = tpu.matmul %35, %37, %cst_16 {dimension_numbers = #tpu.dot_dimension_numbers<[2], [1], [1], [2], [0, 0, 0, 1, 1, 2], [0], [0]>} : vector<4x8x32xbf16>, vector<4x32x16xbf16>, vector<4x8x16xf32> -> vector<4x8x16xf32>
    "tpu.trace_stop"() : () -> ()
    %c0_17 = arith.constant 0 : index
    %c0_18 = arith.constant 0 : index
    %c0_19 = arith.constant 0 : index
    %c0_20 = arith.constant 0 : index
    %39 = vector.load %arg5[%c0_17, %c0_18, %c0_19, %c0_20] : memref<2x4x1x16xf32, #tpu.memory_space<vmem>>, vector<1x4x1x16xf32>
    %40 = vector.shape_cast %39 : vector<1x4x1x16xf32> to vector<4x1x16xf32>
    %41 = vector.broadcast %40 : vector<4x1x16xf32> to vector<4x8x16xf32>
    %42 = arith.addf %38, %41 : vector<4x8x16xf32>
    %c0_21 = arith.constant 0 : index
    %c0_22 = arith.constant 0 : index
    %c0_23 = arith.constant 0 : index
    %c0_24 = arith.constant 0 : index
    %43 = vector.load %arg6[%c0_21, %c0_22, %c0_23, %c0_24] : memref<2x4x32x16xbf16, #tpu.memory_space<vmem>>, vector<1x4x32x16xbf16>
    %44 = vector.shape_cast %43 : vector<1x4x32x16xbf16> to vector<4x32x16xbf16>
    "tpu.trace_start"() <{level = 10 : i32, message = "nsh,nhd->nsd"}> : () -> ()
    %cst_25 = arith.constant dense<0.000000e+00> : vector<4x8x16xf32>
    %45 = tpu.matmul %35, %44, %cst_25 {dimension_numbers = #tpu.dot_dimension_numbers<[2], [1], [1], [2], [0, 0, 0, 1, 1, 2], [0], [0]>} : vector<4x8x32xbf16>, vector<4x32x16xbf16>, vector<4x8x16xf32> -> vector<4x8x16xf32>
    "tpu.trace_stop"() : () -> ()
    %c0_26 = arith.constant 0 : index
    %c0_27 = arith.constant 0 : index
    %c0_28 = arith.constant 0 : index
    %c0_29 = arith.constant 0 : index
    %46 = vector.load %arg7[%c0_26, %c0_27, %c0_28, %c0_29] : memref<2x4x1x16xf32, #tpu.memory_space<vmem>>, vector<1x4x1x16xf32>
    %47 = vector.shape_cast %46 : vector<1x4x1x16xf32> to vector<4x1x16xf32>
    %48 = vector.broadcast %47 : vector<4x1x16xf32> to vector<4x8x16xf32>
    %49 = arith.addf %45, %48 : vector<4x8x16xf32>
    %c0_30 = arith.constant 0 : index
    %c0_31 = arith.constant 0 : index
    %c0_32 = arith.constant 0 : index
    %c0_33 = arith.constant 0 : index
    %50 = vector.load %arg8[%c0_30, %c0_31, %c0_32, %c0_33] : memref<2x4x32x16xbf16, #tpu.memory_space<vmem>>, vector<1x4x32x16xbf16>
    %51 = vector.shape_cast %50 : vector<1x4x32x16xbf16> to vector<4x32x16xbf16>
    "tpu.trace_start"() <{level = 10 : i32, message = "nsh,nhd->nsd"}> : () -> ()
    %cst_34 = arith.constant dense<0.000000e+00> : vector<4x8x16xf32>
    %52 = tpu.matmul %35, %51, %cst_34 {dimension_numbers = #tpu.dot_dimension_numbers<[2], [1], [1], [2], [0, 0, 0, 1, 1, 2], [0], [0]>} : vector<4x8x32xbf16>, vector<4x32x16xbf16>, vector<4x8x16xf32> -> vector<4x8x16xf32>
    "tpu.trace_stop"() : () -> ()
    %c0_35 = arith.constant 0 : index
    %c0_36 = arith.constant 0 : index
    %c0_37 = arith.constant 0 : index
    %c0_38 = arith.constant 0 : index
    %53 = vector.load %arg9[%c0_35, %c0_36, %c0_37, %c0_38] : memref<2x4x1x16xf32, #tpu.memory_space<vmem>>, vector<1x4x1x16xf32>
    %54 = vector.shape_cast %53 : vector<1x4x1x16xf32> to vector<4x1x16xf32>
    %55 = vector.broadcast %54 : vector<4x1x16xf32> to vector<4x8x16xf32>
    %56 = arith.addf %52, %55 : vector<4x8x16xf32>
    %57 = arith.truncf %42 : vector<4x8x16xf32> to vector<4x8x16xbf16>
    %58 = arith.truncf %49 : vector<4x8x16xf32> to vector<4x8x16xbf16>
    "tpu.trace_start"() <{level = 10 : i32, message = "nqd,nkd->nqk"}> : () -> ()
    %cst_39 = arith.constant dense<0.000000e+00> : vector<4x8x8xf32>
    %59 = tpu.matmul %57, %58, %cst_39 {dimension_numbers = #tpu.dot_dimension_numbers<[2], [2], [1], [1], [0, 0, 0, 1, 1, 1], [0], [0]>} : vector<4x8x16xbf16>, vector<4x8x16xbf16>, vector<4x8x8xf32> -> vector<4x8x8xf32>
    "tpu.trace_stop"() : () -> ()
    %cst_40 = arith.constant 2.500000e-01 : f32
    %60 = vector.broadcast %cst_40 : f32 to vector<4x8x8xf32>
    %61 = arith.mulf %59, %60 : vector<4x8x8xf32>
    %62 = vector.broadcast %25 : vector<4x1x8xf32> to vector<4x8x8xf32>
    %63 = arith.addf %61, %62 : vector<4x8x8xf32>
    %cst_41 = arith.constant dense<0xFF800000> : vector<4x8xf32>
    %64 = vector.multi_reduction <maximumf>, %63, %cst_41 [2] : vector<4x8x8xf32> to vector<4x8xf32>
    %65 = vector.shape_cast %64 : vector<4x8xf32> to vector<4x8x1xf32>
    %66 = vector.broadcast %65 : vector<4x8x1xf32> to vector<4x8x8xf32>
    %67 = arith.subf %63, %66 : vector<4x8x8xf32>
    %68 = math.exp %67 : vector<4x8x8xf32>
    %cst_42 = arith.constant dense<0.000000e+00> : vector<4x8xf32>
    %69 = vector.multi_reduction <add>, %68, %cst_42 [2] : vector<4x8x8xf32> to vector<4x8xf32>
    %70 = vector.shape_cast %69 : vector<4x8xf32> to vector<4x8x1xf32>
    %71 = tpu.reciprocal %70 {approx = true} : vector<4x8x1xf32> -> vector<4x8x1xf32>
    %72 = vector.broadcast %71 : vector<4x8x1xf32> to vector<4x8x8xf32>
    %73 = arith.mulf %68, %72 : vector<4x8x8xf32>
    %74 = arith.truncf %73 : vector<4x8x8xf32> to vector<4x8x8xbf16>
    %75 = arith.truncf %56 : vector<4x8x16xf32> to vector<4x8x16xbf16>
    "tpu.trace_start"() <{level = 10 : i32, message = "nqk,nkd->nqd"}> : () -> ()
    %cst_43 = arith.constant dense<0.000000e+00> : vector<4x8x16xf32>
    %76 = tpu.matmul %74, %75, %cst_43 {dimension_numbers = #tpu.dot_dimension_numbers<[2], [1], [1], [2], [0, 0, 0, 1, 1, 2], [0], [0]>} : vector<4x8x8xbf16>, vector<4x8x16xbf16>, vector<4x8x16xf32> -> vector<4x8x16xf32>
    "tpu.trace_stop"() : () -> ()
    %77 = arith.truncf %76 : vector<4x8x16xf32> to vector<4x8x16xbf16>
    %c0_44 = arith.constant 0 : index
    %c0_45 = arith.constant 0 : index
    %c0_46 = arith.constant 0 : index
    %c0_47 = arith.constant 0 : index
    %78 = vector.load %arg10[%c0_44, %c0_45, %c0_46, %c0_47] : memref<2x4x16x32xbf16, #tpu.memory_space<vmem>>, vector<1x4x16x32xbf16>
    %79 = vector.shape_cast %78 : vector<1x4x16x32xbf16> to vector<4x16x32xbf16>
    "tpu.trace_start"() <{level = 10 : i32, message = "nsd,ndh->nsh"}> : () -> ()
    %cst_48 = arith.constant dense<0.000000e+00> : vector<4x8x32xf32>
    %80 = tpu.matmul %77, %79, %cst_48 {dimension_numbers = #tpu.dot_dimension_numbers<[2], [1], [1], [2], [0, 0, 0, 1, 1, 2], [0], [0]>} : vector<4x8x16xbf16>, vector<4x16x32xbf16>, vector<4x8x32xf32> -> vector<4x8x32xf32>
    "tpu.trace_stop"() : () -> ()
    %81 = vector.extract_strided_slice %80 {offsets = [0, 0, 0], sizes = [1, 8, 32], strides = [1, 1, 1]} : vector<4x8x32xf32> to vector<1x8x32xf32>
    %82 = vector.shape_cast %81 : vector<1x8x32xf32> to vector<8x32xf32>
    %83 = vector.extract_strided_slice %80 {offsets = [1, 0, 0], sizes = [1, 8, 32], strides = [1, 1, 1]} : vector<4x8x32xf32> to vector<1x8x32xf32>
    %84 = vector.shape_cast %83 : vector<1x8x32xf32> to vector<8x32xf32>
    %85 = arith.addf %82, %84 : vector<8x32xf32>
    %86 = vector.extract_strided_slice %80 {offsets = [2, 0, 0], sizes = [1, 8, 32], strides = [1, 1, 1]} : vector<4x8x32xf32> to vector<1x8x32xf32>
    %87 = vector.shape_cast %86 : vector<1x8x32xf32> to vector<8x32xf32>
    %88 = vector.extract_strided_slice %80 {offsets = [3, 0, 0], sizes = [1, 8, 32], strides = [1, 1, 1]} : vector<4x8x32xf32> to vector<1x8x32xf32>
    %89 = vector.shape_cast %88 : vector<1x8x32xf32> to vector<8x32xf32>
    %90 = arith.addf %87, %89 : vector<8x32xf32>
    %91 = tpu.concatenate %85, %90 in 0 : vector<8x32xf32>, vector<8x32xf32> -> vector<16x32xf32>
    %c0_49 = arith.constant 0 : index
    %c0_50 = arith.constant 0 : index
    %c0_51 = arith.constant 0 : index
    %92 = vector.load %arg11[%c0_49, %c0_50, %c0_51] : memref<2x1x32xf32, #tpu.memory_space<vmem>>, vector<1x1x32xf32>
    %93 = vector.shape_cast %92 : vector<1x1x32xf32> to vector<1x32xf32>
    %94 = vector.broadcast %93 : vector<1x32xf32> to vector<16x32xf32>
    %95 = arith.addf %91, %94 : vector<16x32xf32>
    %96 = arith.addf %95, %24 : vector<16x32xf32>
    %c0_52 = arith.constant 0 : index
    %c0_53 = arith.constant 0 : index
    %c0_54 = arith.constant 0 : index
    %97 = vector.load %arg12[%c0_52, %c0_53, %c0_54] : memref<2x1x32xf32, #tpu.memory_space<vmem>>, vector<1x1x32xf32>
    %98 = vector.shape_cast %97 : vector<1x1x32xf32> to vector<1x32xf32>
    %c0_55 = arith.constant 0 : index
    %c0_56 = arith.constant 0 : index
    %c0_57 = arith.constant 0 : index
    %99 = vector.load %arg13[%c0_55, %c0_56, %c0_57] : memref<2x1x32xf32, #tpu.memory_space<vmem>>, vector<1x1x32xf32>
    %100 = vector.shape_cast %99 : vector<1x1x32xf32> to vector<1x32xf32>
    %cst_58 = arith.constant dense<0.000000e+00> : vector<16xf32>
    %101 = vector.multi_reduction <add>, %96, %cst_58 [1] : vector<16x32xf32> to vector<16xf32>
    %102 = vector.shape_cast %101 : vector<16xf32> to vector<16x1xf32>
    %cst_59 = arith.constant 3.200000e+01 : f32
    %103 = vector.broadcast %cst_59 : f32 to vector<16x1xf32>
    %104 = arith.divf %102, %103 : vector<16x1xf32>
    %105 = vector.broadcast %104 : vector<16x1xf32> to vector<16x32xf32>
    %106 = arith.subf %96, %105 : vector<16x32xf32>
    %107 = arith.mulf %106, %106 : vector<16x32xf32>
    %cst_60 = arith.constant dense<0.000000e+00> : vector<16xf32>
    %108 = vector.multi_reduction <add>, %107, %cst_60 [1] : vector<16x32xf32> to vector<16xf32>
    %109 = vector.shape_cast %108 : vector<16xf32> to vector<16x1xf32>
    %cst_61 = arith.constant 3.200000e+01 : f32
    %110 = vector.broadcast %cst_61 : f32 to vector<16x1xf32>
    %111 = arith.divf %109, %110 : vector<16x1xf32>
    %112 = vector.broadcast %104 : vector<16x1xf32> to vector<16x32xf32>
    %113 = arith.subf %96, %112 : vector<16x32xf32>
    %cst_62 = arith.constant 9.99999996E-13 : f32
    %114 = vector.broadcast %cst_62 : f32 to vector<16x1xf32>
    %115 = arith.addf %111, %114 : vector<16x1xf32>
    %116 = math.rsqrt %115 : vector<16x1xf32>
    %117 = vector.broadcast %116 : vector<16x1xf32> to vector<16x32xf32>
    %118 = arith.mulf %113, %117 : vector<16x32xf32>
    %119 = vector.broadcast %98 : vector<1x32xf32> to vector<16x32xf32>
    %120 = arith.mulf %118, %119 : vector<16x32xf32>
    %121 = vector.broadcast %100 : vector<1x32xf32> to vector<16x32xf32>
    %122 = arith.addf %120, %121 : vector<16x32xf32>
    %c0_63 = arith.constant 0 : index
    %c0_64 = arith.constant 0 : index
    %c0_65 = arith.constant 0 : index
    %123 = vector.load %arg14[%c0_63, %c0_64, %c0_65] : memref<2x32x64xbf16, #tpu.memory_space<vmem>>, vector<1x32x64xbf16>
    %124 = vector.shape_cast %123 : vector<1x32x64xbf16> to vector<32x64xbf16>
    %c0_66 = arith.constant 0 : index
    %c0_67 = arith.constant 0 : index
    %c0_68 = arith.constant 0 : index
    %125 = vector.load %arg15[%c0_66, %c0_67, %c0_68] : memref<2x1x64xf32, #tpu.memory_space<vmem>>, vector<1x1x64xf32>
    %126 = vector.shape_cast %125 : vector<1x1x64xf32> to vector<1x64xf32>
    %127 = arith.truncf %122 : vector<16x32xf32> to vector<16x32xbf16>
    %cst_69 = arith.constant dense<0.000000e+00> : vector<16x64xf32>
    %128 = tpu.matmul %127, %124, %cst_69 {dimension_numbers = #tpu.dot_dimension_numbers<[1], [0], [0], [1], [0, 0, 1, 1], [], []>} : vector<16x32xbf16>, vector<32x64xbf16>, vector<16x64xf32> -> vector<16x64xf32>
    %129 = vector.broadcast %126 : vector<1x64xf32> to vector<16x64xf32>
    %130 = arith.addf %128, %129 : vector<16x64xf32>
    %cst_70 = arith.constant 5.000000e-01 : f32
    %131 = vector.broadcast %cst_70 : f32 to vector<16x64xf32>
    %132 = arith.mulf %131, %130 : vector<16x64xf32>
    %cst_71 = arith.constant 4.471500e-02 : f32
    %133 = vector.broadcast %cst_71 : f32 to vector<16x64xf32>
    %134 = arith.mulf %133, %130 : vector<16x64xf32>
    %135 = arith.mulf %134, %130 : vector<16x64xf32>
    %136 = arith.mulf %135, %130 : vector<16x64xf32>
    %137 = arith.addf %130, %136 : vector<16x64xf32>
    %cst_72 = arith.constant 0.797884583 : f32
    %138 = vector.broadcast %cst_72 : f32 to vector<16x64xf32>
    %139 = arith.mulf %138, %137 : vector<16x64xf32>
    %140 = math.tanh %139 : vector<16x64xf32>
    %cst_73 = arith.constant 1.000000e+00 : f32
    %141 = vector.broadcast %cst_73 : f32 to vector<16x64xf32>
    %142 = arith.addf %141, %140 : vector<16x64xf32>
    %143 = arith.mulf %132, %142 : vector<16x64xf32>
    %c0_74 = arith.constant 0 : index
    %c0_75 = arith.constant 0 : index
    %c0_76 = arith.constant 0 : index
    %144 = vector.load %arg16[%c0_74, %c0_75, %c0_76] : memref<2x64x32xbf16, #tpu.memory_space<vmem>>, vector<1x64x32xbf16>
    %145 = vector.shape_cast %144 : vector<1x64x32xbf16> to vector<64x32xbf16>
    %c0_77 = arith.constant 0 : index
    %c0_78 = arith.constant 0 : index
    %c0_79 = arith.constant 0 : index
    %146 = vector.load %arg17[%c0_77, %c0_78, %c0_79] : memref<2x1x32xf32, #tpu.memory_space<vmem>>, vector<1x1x32xf32>
    %147 = vector.shape_cast %146 : vector<1x1x32xf32> to vector<1x32xf32>
    %148 = arith.truncf %143 : vector<16x64xf32> to vector<16x64xbf16>
    %cst_80 = arith.constant dense<0.000000e+00> : vector<16x32xf32>
    %149 = tpu.matmul %148, %145, %cst_80 {dimension_numbers = #tpu.dot_dimension_numbers<[1], [0], [0], [1], [0, 0, 1, 1], [], []>} : vector<16x64xbf16>, vector<64x32xbf16>, vector<16x32xf32> -> vector<16x32xf32>
    %150 = vector.broadcast %147 : vector<1x32xf32> to vector<16x32xf32>
    %151 = arith.addf %149, %150 : vector<16x32xf32>
    %152 = arith.addf %151, %122 : vector<16x32xf32>
    %c0_81 = arith.constant 0 : index
    %c0_82 = arith.constant 0 : index
    %c0_83 = arith.constant 0 : index
    %153 = vector.load %arg18[%c0_81, %c0_82, %c0_83] : memref<2x1x32xf32, #tpu.memory_space<vmem>>, vector<1x1x32xf32>
    %154 = vector.shape_cast %153 : vector<1x1x32xf32> to vector<1x32xf32>
    %c0_84 = arith.constant 0 : index
    %c0_85 = arith.constant 0 : index
    %c0_86 = arith.constant 0 : index
    %155 = vector.load %arg19[%c0_84, %c0_85, %c0_86] : memref<2x1x32xf32, #tpu.memory_space<vmem>>, vector<1x1x32xf32>
    %156 = vector.shape_cast %155 : vector<1x1x32xf32> to vector<1x32xf32>
    %cst_87 = arith.constant dense<0.000000e+00> : vector<16xf32>
    %157 = vector.multi_reduction <add>, %152, %cst_87 [1] : vector<16x32xf32> to vector<16xf32>
    %158 = vector.shape_cast %157 : vector<16xf32> to vector<16x1xf32>
    %cst_88 = arith.constant 3.200000e+01 : f32
    %159 = vector.broadcast %cst_88 : f32 to vector<16x1xf32>
    %160 = arith.divf %158, %159 : vector<16x1xf32>
    %161 = vector.broadcast %160 : vector<16x1xf32> to vector<16x32xf32>
    %162 = arith.subf %152, %161 : vector<16x32xf32>
    %163 = arith.mulf %162, %162 : vector<16x32xf32>
    %cst_89 = arith.constant dense<0.000000e+00> : vector<16xf32>
    %164 = vector.multi_reduction <add>, %163, %cst_89 [1] : vector<16x32xf32> to vector<16xf32>
    %165 = vector.shape_cast %164 : vector<16xf32> to vector<16x1xf32>
    %cst_90 = arith.constant 3.200000e+01 : f32
    %166 = vector.broadcast %cst_90 : f32 to vector<16x1xf32>
    %167 = arith.divf %165, %166 : vector<16x1xf32>
    %168 = vector.broadcast %160 : vector<16x1xf32> to vector<16x32xf32>
    %169 = arith.subf %152, %168 : vector<16x32xf32>
    %cst_91 = arith.constant 9.99999996E-13 : f32
    %170 = vector.broadcast %cst_91 : f32 to vector<16x1xf32>
    %171 = arith.addf %167, %170 : vector<16x1xf32>
    %172 = math.rsqrt %171 : vector<16x1xf32>
    %173 = vector.broadcast %172 : vector<16x1xf32> to vector<16x32xf32>
    %174 = arith.mulf %169, %173 : vector<16x32xf32>
    %175 = vector.broadcast %154 : vector<1x32xf32> to vector<16x32xf32>
    %176 = arith.mulf %174, %175 : vector<16x32xf32>
    %177 = vector.broadcast %156 : vector<1x32xf32> to vector<16x32xf32>
    %178 = arith.addf %176, %177 : vector<16x32xf32>
    %179 = vector.extract_strided_slice %178 {offsets = [0, 0], sizes = [8, 32], strides = [1, 1]} : vector<16x32xf32> to vector<8x32xf32>
    %180 = vector.extract_strided_slice %178 {offsets = [0, 0], sizes = [8, 32], strides = [1, 1]} : vector<16x32xf32> to vector<8x32xf32>
    %181 = vector.extract_strided_slice %178 {offsets = [8, 0], sizes = [8, 32], strides = [1, 1]} : vector<16x32xf32> to vector<8x32xf32>
    %182 = vector.extract_strided_slice %178 {offsets = [8, 0], sizes = [8, 32], strides = [1, 1]} : vector<16x32xf32> to vector<8x32xf32>
    %183 = vector.shape_cast %179 : vector<8x32xf32> to vector<1x8x32xf32>
    %184 = vector.shape_cast %180 : vector<8x32xf32> to vector<1x8x32xf32>
    %185 = vector.shape_cast %181 : vector<8x32xf32> to vector<1x8x32xf32>
    %186 = vector.shape_cast %182 : vector<8x32xf32> to vector<1x8x32xf32>
    %187 = tpu.concatenate %183, %184, %185, %186 in 0 : vector<1x8x32xf32>, vector<1x8x32xf32>, vector<1x8x32xf32>, vector<1x8x32xf32> -> vector<4x8x32xf32>
    %188 = arith.truncf %187 : vector<4x8x32xf32> to vector<4x8x32xbf16>
    %c1 = arith.constant 1 : index
    %c0_92 = arith.constant 0 : index
    %c0_93 = arith.constant 0 : index
    %c0_94 = arith.constant 0 : index
    %189 = vector.load %arg4[%c1, %c0_92, %c0_93, %c0_94] : memref<2x4x32x16xbf16, #tpu.memory_space<vmem>>, vector<1x4x32x16xbf16>
    %190 = vector.shape_cast %189 : vector<1x4x32x16xbf16> to vector<4x32x16xbf16>
    "tpu.trace_start"() <{level = 10 : i32, message = "nsh,nhd->nsd"}> : () -> ()
    %cst_95 = arith.constant dense<0.000000e+00> : vector<4x8x16xf32>
    %191 = tpu.matmul %188, %190, %cst_95 {dimension_numbers = #tpu.dot_dimension_numbers<[2], [1], [1], [2], [0, 0, 0, 1, 1, 2], [0], [0]>} : vector<4x8x32xbf16>, vector<4x32x16xbf16>, vector<4x8x16xf32> -> vector<4x8x16xf32>
    "tpu.trace_stop"() : () -> ()
    %c1_96 = arith.constant 1 : index
    %c0_97 = arith.constant 0 : index
    %c0_98 = arith.constant 0 : index
    %c0_99 = arith.constant 0 : index
    %192 = vector.load %arg5[%c1_96, %c0_97, %c0_98, %c0_99] : memref<2x4x1x16xf32, #tpu.memory_space<vmem>>, vector<1x4x1x16xf32>
    %193 = vector.shape_cast %192 : vector<1x4x1x16xf32> to vector<4x1x16xf32>
    %194 = vector.broadcast %193 : vector<4x1x16xf32> to vector<4x8x16xf32>
    %195 = arith.addf %191, %194 : vector<4x8x16xf32>
    %c1_100 = arith.constant 1 : index
    %c0_101 = arith.constant 0 : index
    %c0_102 = arith.constant 0 : index
    %c0_103 = arith.constant 0 : index
    %196 = vector.load %arg6[%c1_100, %c0_101, %c0_102, %c0_103] : memref<2x4x32x16xbf16, #tpu.memory_space<vmem>>, vector<1x4x32x16xbf16>
    %197 = vector.shape_cast %196 : vector<1x4x32x16xbf16> to vector<4x32x16xbf16>
    "tpu.trace_start"() <{level = 10 : i32, message = "nsh,nhd->nsd"}> : () -> ()
    %cst_104 = arith.constant dense<0.000000e+00> : vector<4x8x16xf32>
    %198 = tpu.matmul %188, %197, %cst_104 {dimension_numbers = #tpu.dot_dimension_numbers<[2], [1], [1], [2], [0, 0, 0, 1, 1, 2], [0], [0]>} : vector<4x8x32xbf16>, vector<4x32x16xbf16>, vector<4x8x16xf32> -> vector<4x8x16xf32>
    "tpu.trace_stop"() : () -> ()
    %c1_105 = arith.constant 1 : index
    %c0_106 = arith.constant 0 : index
    %c0_107 = arith.constant 0 : index
    %c0_108 = arith.constant 0 : index
    %199 = vector.load %arg7[%c1_105, %c0_106, %c0_107, %c0_108] : memref<2x4x1x16xf32, #tpu.memory_space<vmem>>, vector<1x4x1x16xf32>
    %200 = vector.shape_cast %199 : vector<1x4x1x16xf32> to vector<4x1x16xf32>
    %201 = vector.broadcast %200 : vector<4x1x16xf32> to vector<4x8x16xf32>
    %202 = arith.addf %198, %201 : vector<4x8x16xf32>
    %c1_109 = arith.constant 1 : index
    %c0_110 = arith.constant 0 : index
    %c0_111 = arith.constant 0 : index
    %c0_112 = arith.constant 0 : index
    %203 = vector.load %arg8[%c1_109, %c0_110, %c0_111, %c0_112] : memref<2x4x32x16xbf16, #tpu.memory_space<vmem>>, vector<1x4x32x16xbf16>
    %204 = vector.shape_cast %203 : vector<1x4x32x16xbf16> to vector<4x32x16xbf16>
    "tpu.trace_start"() <{level = 10 : i32, message = "nsh,nhd->nsd"}> : () -> ()
    %cst_113 = arith.constant dense<0.000000e+00> : vector<4x8x16xf32>
    %205 = tpu.matmul %188, %204, %cst_113 {dimension_numbers = #tpu.dot_dimension_numbers<[2], [1], [1], [2], [0, 0, 0, 1, 1, 2], [0], [0]>} : vector<4x8x32xbf16>, vector<4x32x16xbf16>, vector<4x8x16xf32> -> vector<4x8x16xf32>
    "tpu.trace_stop"() : () -> ()
    %c1_114 = arith.constant 1 : index
    %c0_115 = arith.constant 0 : index
    %c0_116 = arith.constant 0 : index
    %c0_117 = arith.constant 0 : index
    %206 = vector.load %arg9[%c1_114, %c0_115, %c0_116, %c0_117] : memref<2x4x1x16xf32, #tpu.memory_space<vmem>>, vector<1x4x1x16xf32>
    %207 = vector.shape_cast %206 : vector<1x4x1x16xf32> to vector<4x1x16xf32>
    %208 = vector.broadcast %207 : vector<4x1x16xf32> to vector<4x8x16xf32>
    %209 = arith.addf %205, %208 : vector<4x8x16xf32>
    %210 = arith.truncf %195 : vector<4x8x16xf32> to vector<4x8x16xbf16>
    %211 = arith.truncf %202 : vector<4x8x16xf32> to vector<4x8x16xbf16>
    "tpu.trace_start"() <{level = 10 : i32, message = "nqd,nkd->nqk"}> : () -> ()
    %cst_118 = arith.constant dense<0.000000e+00> : vector<4x8x8xf32>
    %212 = tpu.matmul %210, %211, %cst_118 {dimension_numbers = #tpu.dot_dimension_numbers<[2], [2], [1], [1], [0, 0, 0, 1, 1, 1], [0], [0]>} : vector<4x8x16xbf16>, vector<4x8x16xbf16>, vector<4x8x8xf32> -> vector<4x8x8xf32>
    "tpu.trace_stop"() : () -> ()
    %cst_119 = arith.constant 2.500000e-01 : f32
    %213 = vector.broadcast %cst_119 : f32 to vector<4x8x8xf32>
    %214 = arith.mulf %212, %213 : vector<4x8x8xf32>
    %215 = vector.broadcast %25 : vector<4x1x8xf32> to vector<4x8x8xf32>
    %216 = arith.addf %214, %215 : vector<4x8x8xf32>
    %cst_120 = arith.constant dense<0xFF800000> : vector<4x8xf32>
    %217 = vector.multi_reduction <maximumf>, %216, %cst_120 [2] : vector<4x8x8xf32> to vector<4x8xf32>
    %218 = vector.shape_cast %217 : vector<4x8xf32> to vector<4x8x1xf32>
    %219 = vector.broadcast %218 : vector<4x8x1xf32> to vector<4x8x8xf32>
    %220 = arith.subf %216, %219 : vector<4x8x8xf32>
    %221 = math.exp %220 : vector<4x8x8xf32>
    %cst_121 = arith.constant dense<0.000000e+00> : vector<4x8xf32>
    %222 = vector.multi_reduction <add>, %221, %cst_121 [2] : vector<4x8x8xf32> to vector<4x8xf32>
    %223 = vector.shape_cast %222 : vector<4x8xf32> to vector<4x8x1xf32>
    %224 = tpu.reciprocal %223 {approx = true} : vector<4x8x1xf32> -> vector<4x8x1xf32>
    %225 = vector.broadcast %224 : vector<4x8x1xf32> to vector<4x8x8xf32>
    %226 = arith.mulf %221, %225 : vector<4x8x8xf32>
    %227 = arith.truncf %226 : vector<4x8x8xf32> to vector<4x8x8xbf16>
    %228 = arith.truncf %209 : vector<4x8x16xf32> to vector<4x8x16xbf16>
    "tpu.trace_start"() <{level = 10 : i32, message = "nqk,nkd->nqd"}> : () -> ()
    %cst_122 = arith.constant dense<0.000000e+00> : vector<4x8x16xf32>
    %229 = tpu.matmul %227, %228, %cst_122 {dimension_numbers = #tpu.dot_dimension_numbers<[2], [1], [1], [2], [0, 0, 0, 1, 1, 2], [0], [0]>} : vector<4x8x8xbf16>, vector<4x8x16xbf16>, vector<4x8x16xf32> -> vector<4x8x16xf32>
    "tpu.trace_stop"() : () -> ()
    %230 = arith.truncf %229 : vector<4x8x16xf32> to vector<4x8x16xbf16>
    %c1_123 = arith.constant 1 : index
    %c0_124 = arith.constant 0 : index
    %c0_125 = arith.constant 0 : index
    %c0_126 = arith.constant 0 : index
    %231 = vector.load %arg10[%c1_123, %c0_124, %c0_125, %c0_126] : memref<2x4x16x32xbf16, #tpu.memory_space<vmem>>, vector<1x4x16x32xbf16>
    %232 = vector.shape_cast %231 : vector<1x4x16x32xbf16> to vector<4x16x32xbf16>
    "tpu.trace_start"() <{level = 10 : i32, message = "nsd,ndh->nsh"}> : () -> ()
    %cst_127 = arith.constant dense<0.000000e+00> : vector<4x8x32xf32>
    %233 = tpu.matmul %230, %232, %cst_127 {dimension_numbers = #tpu.dot_dimension_numbers<[2], [1], [1], [2], [0, 0, 0, 1, 1, 2], [0], [0]>} : vector<4x8x16xbf16>, vector<4x16x32xbf16>, vector<4x8x32xf32> -> vector<4x8x32xf32>
    "tpu.trace_stop"() : () -> ()
    %234 = vector.extract_strided_slice %233 {offsets = [0, 0, 0], sizes = [1, 8, 32], strides = [1, 1, 1]} : vector<4x8x32xf32> to vector<1x8x32xf32>
    %235 = vector.shape_cast %234 : vector<1x8x32xf32> to vector<8x32xf32>
    %236 = vector.extract_strided_slice %233 {offsets = [1, 0, 0], sizes = [1, 8, 32], strides = [1, 1, 1]} : vector<4x8x32xf32> to vector<1x8x32xf32>
    %237 = vector.shape_cast %236 : vector<1x8x32xf32> to vector<8x32xf32>
    %238 = arith.addf %235, %237 : vector<8x32xf32>
    %239 = vector.extract_strided_slice %233 {offsets = [2, 0, 0], sizes = [1, 8, 32], strides = [1, 1, 1]} : vector<4x8x32xf32> to vector<1x8x32xf32>
    %240 = vector.shape_cast %239 : vector<1x8x32xf32> to vector<8x32xf32>
    %241 = vector.extract_strided_slice %233 {offsets = [3, 0, 0], sizes = [1, 8, 32], strides = [1, 1, 1]} : vector<4x8x32xf32> to vector<1x8x32xf32>
    %242 = vector.shape_cast %241 : vector<1x8x32xf32> to vector<8x32xf32>
    %243 = arith.addf %240, %242 : vector<8x32xf32>
    %244 = tpu.concatenate %238, %243 in 0 : vector<8x32xf32>, vector<8x32xf32> -> vector<16x32xf32>
    %c1_128 = arith.constant 1 : index
    %c0_129 = arith.constant 0 : index
    %c0_130 = arith.constant 0 : index
    %245 = vector.load %arg11[%c1_128, %c0_129, %c0_130] : memref<2x1x32xf32, #tpu.memory_space<vmem>>, vector<1x1x32xf32>
    %246 = vector.shape_cast %245 : vector<1x1x32xf32> to vector<1x32xf32>
    %247 = vector.broadcast %246 : vector<1x32xf32> to vector<16x32xf32>
    %248 = arith.addf %244, %247 : vector<16x32xf32>
    %249 = arith.addf %248, %178 : vector<16x32xf32>
    %c1_131 = arith.constant 1 : index
    %c0_132 = arith.constant 0 : index
    %c0_133 = arith.constant 0 : index
    %250 = vector.load %arg12[%c1_131, %c0_132, %c0_133] : memref<2x1x32xf32, #tpu.memory_space<vmem>>, vector<1x1x32xf32>
    %251 = vector.shape_cast %250 : vector<1x1x32xf32> to vector<1x32xf32>
    %c1_134 = arith.constant 1 : index
    %c0_135 = arith.constant 0 : index
    %c0_136 = arith.constant 0 : index
    %252 = vector.load %arg13[%c1_134, %c0_135, %c0_136] : memref<2x1x32xf32, #tpu.memory_space<vmem>>, vector<1x1x32xf32>
    %253 = vector.shape_cast %252 : vector<1x1x32xf32> to vector<1x32xf32>
    %cst_137 = arith.constant dense<0.000000e+00> : vector<16xf32>
    %254 = vector.multi_reduction <add>, %249, %cst_137 [1] : vector<16x32xf32> to vector<16xf32>
    %255 = vector.shape_cast %254 : vector<16xf32> to vector<16x1xf32>
    %cst_138 = arith.constant 3.200000e+01 : f32
    %256 = vector.broadcast %cst_138 : f32 to vector<16x1xf32>
    %257 = arith.divf %255, %256 : vector<16x1xf32>
    %258 = vector.broadcast %257 : vector<16x1xf32> to vector<16x32xf32>
    %259 = arith.subf %249, %258 : vector<16x32xf32>
    %260 = arith.mulf %259, %259 : vector<16x32xf32>
    %cst_139 = arith.constant dense<0.000000e+00> : vector<16xf32>
    %261 = vector.multi_reduction <add>, %260, %cst_139 [1] : vector<16x32xf32> to vector<16xf32>
    %262 = vector.shape_cast %261 : vector<16xf32> to vector<16x1xf32>
    %cst_140 = arith.constant 3.200000e+01 : f32
    %263 = vector.broadcast %cst_140 : f32 to vector<16x1xf32>
    %264 = arith.divf %262, %263 : vector<16x1xf32>
    %265 = vector.broadcast %257 : vector<16x1xf32> to vector<16x32xf32>
    %266 = arith.subf %249, %265 : vector<16x32xf32>
    %cst_141 = arith.constant 9.99999996E-13 : f32
    %267 = vector.broadcast %cst_141 : f32 to vector<16x1xf32>
    %268 = arith.addf %264, %267 : vector<16x1xf32>
    %269 = math.rsqrt %268 : vector<16x1xf32>
    %270 = vector.broadcast %269 : vector<16x1xf32> to vector<16x32xf32>
    %271 = arith.mulf %266, %270 : vector<16x32xf32>
    %272 = vector.broadcast %251 : vector<1x32xf32> to vector<16x32xf32>
    %273 = arith.mulf %271, %272 : vector<16x32xf32>
    %274 = vector.broadcast %253 : vector<1x32xf32> to vector<16x32xf32>
    %275 = arith.addf %273, %274 : vector<16x32xf32>
    %c1_142 = arith.constant 1 : index
    %c0_143 = arith.constant 0 : index
    %c0_144 = arith.constant 0 : index
    %276 = vector.load %arg14[%c1_142, %c0_143, %c0_144] : memref<2x32x64xbf16, #tpu.memory_space<vmem>>, vector<1x32x64xbf16>
    %277 = vector.shape_cast %276 : vector<1x32x64xbf16> to vector<32x64xbf16>
    %c1_145 = arith.constant 1 : index
    %c0_146 = arith.constant 0 : index
    %c0_147 = arith.constant 0 : index
    %278 = vector.load %arg15[%c1_145, %c0_146, %c0_147] : memref<2x1x64xf32, #tpu.memory_space<vmem>>, vector<1x1x64xf32>
    %279 = vector.shape_cast %278 : vector<1x1x64xf32> to vector<1x64xf32>
    %280 = arith.truncf %275 : vector<16x32xf32> to vector<16x32xbf16>
    %cst_148 = arith.constant dense<0.000000e+00> : vector<16x64xf32>
    %281 = tpu.matmul %280, %277, %cst_148 {dimension_numbers = #tpu.dot_dimension_numbers<[1], [0], [0], [1], [0, 0, 1, 1], [], []>} : vector<16x32xbf16>, vector<32x64xbf16>, vector<16x64xf32> -> vector<16x64xf32>
    %282 = vector.broadcast %279 : vector<1x64xf32> to vector<16x64xf32>
    %283 = arith.addf %281, %282 : vector<16x64xf32>
    %cst_149 = arith.constant 5.000000e-01 : f32
    %284 = vector.broadcast %cst_149 : f32 to vector<16x64xf32>
    %285 = arith.mulf %284, %283 : vector<16x64xf32>
    %cst_150 = arith.constant 4.471500e-02 : f32
    %286 = vector.broadcast %cst_150 : f32 to vector<16x64xf32>
    %287 = arith.mulf %286, %283 : vector<16x64xf32>
    %288 = arith.mulf %287, %283 : vector<16x64xf32>
    %289 = arith.mulf %288, %283 : vector<16x64xf32>
    %290 = arith.addf %283, %289 : vector<16x64xf32>
    %cst_151 = arith.constant 0.797884583 : f32
    %291 = vector.broadcast %cst_151 : f32 to vector<16x64xf32>
    %292 = arith.mulf %291, %290 : vector<16x64xf32>
    %293 = math.tanh %292 : vector<16x64xf32>
    %cst_152 = arith.constant 1.000000e+00 : f32
    %294 = vector.broadcast %cst_152 : f32 to vector<16x64xf32>
    %295 = arith.addf %294, %293 : vector<16x64xf32>
    %296 = arith.mulf %285, %295 : vector<16x64xf32>
    %c1_153 = arith.constant 1 : index
    %c0_154 = arith.constant 0 : index
    %c0_155 = arith.constant 0 : index
    %297 = vector.load %arg16[%c1_153, %c0_154, %c0_155] : memref<2x64x32xbf16, #tpu.memory_space<vmem>>, vector<1x64x32xbf16>
    %298 = vector.shape_cast %297 : vector<1x64x32xbf16> to vector<64x32xbf16>
    %c1_156 = arith.constant 1 : index
    %c0_157 = arith.constant 0 : index
    %c0_158 = arith.constant 0 : index
    %299 = vector.load %arg17[%c1_156, %c0_157, %c0_158] : memref<2x1x32xf32, #tpu.memory_space<vmem>>, vector<1x1x32xf32>
    %300 = vector.shape_cast %299 : vector<1x1x32xf32> to vector<1x32xf32>
    %301 = arith.truncf %296 : vector<16x64xf32> to vector<16x64xbf16>
    %cst_159 = arith.constant dense<0.000000e+00> : vector<16x32xf32>
    %302 = tpu.matmul %301, %298, %cst_159 {dimension_numbers = #tpu.dot_dimension_numbers<[1], [0], [0], [1], [0, 0, 1, 1], [], []>} : vector<16x64xbf16>, vector<64x32xbf16>, vector<16x32xf32> -> vector<16x32xf32>
    %303 = vector.broadcast %300 : vector<1x32xf32> to vector<16x32xf32>
    %304 = arith.addf %302, %303 : vector<16x32xf32>
    %305 = arith.addf %304, %275 : vector<16x32xf32>
    %c1_160 = arith.constant 1 : index
    %c0_161 = arith.constant 0 : index
    %c0_162 = arith.constant 0 : index
    %306 = vector.load %arg18[%c1_160, %c0_161, %c0_162] : memref<2x1x32xf32, #tpu.memory_space<vmem>>, vector<1x1x32xf32>
    %307 = vector.shape_cast %306 : vector<1x1x32xf32> to vector<1x32xf32>
    %c1_163 = arith.constant 1 : index
    %c0_164 = arith.constant 0 : index
    %c0_165 = arith.constant 0 : index
    %308 = vector.load %arg19[%c1_163, %c0_164, %c0_165] : memref<2x1x32xf32, #tpu.memory_space<vmem>>, vector<1x1x32xf32>
    %309 = vector.shape_cast %308 : vector<1x1x32xf32> to vector<1x32xf32>
    %cst_166 = arith.constant dense<0.000000e+00> : vector<16xf32>
    %310 = vector.multi_reduction <add>, %305, %cst_166 [1] : vector<16x32xf32> to vector<16xf32>
    %311 = vector.shape_cast %310 : vector<16xf32> to vector<16x1xf32>
    %cst_167 = arith.constant 3.200000e+01 : f32
    %312 = vector.broadcast %cst_167 : f32 to vector<16x1xf32>
    %313 = arith.divf %311, %312 : vector<16x1xf32>
    %314 = vector.broadcast %313 : vector<16x1xf32> to vector<16x32xf32>
    %315 = arith.subf %305, %314 : vector<16x32xf32>
    %316 = arith.mulf %315, %315 : vector<16x32xf32>
    %cst_168 = arith.constant dense<0.000000e+00> : vector<16xf32>
    %317 = vector.multi_reduction <add>, %316, %cst_168 [1] : vector<16x32xf32> to vector<16xf32>
    %318 = vector.shape_cast %317 : vector<16xf32> to vector<16x1xf32>
    %cst_169 = arith.constant 3.200000e+01 : f32
    %319 = vector.broadcast %cst_169 : f32 to vector<16x1xf32>
    %320 = arith.divf %318, %319 : vector<16x1xf32>
    %321 = vector.broadcast %313 : vector<16x1xf32> to vector<16x32xf32>
    %322 = arith.subf %305, %321 : vector<16x32xf32>
    %cst_170 = arith.constant 9.99999996E-13 : f32
    %323 = vector.broadcast %cst_170 : f32 to vector<16x1xf32>
    %324 = arith.addf %320, %323 : vector<16x1xf32>
    %325 = math.rsqrt %324 : vector<16x1xf32>
    %326 = vector.broadcast %325 : vector<16x1xf32> to vector<16x32xf32>
    %327 = arith.mulf %322, %326 : vector<16x32xf32>
    %328 = vector.broadcast %307 : vector<1x32xf32> to vector<16x32xf32>
    %329 = arith.mulf %327, %328 : vector<16x32xf32>
    %330 = vector.broadcast %309 : vector<1x32xf32> to vector<16x32xf32>
    %331 = arith.addf %329, %330 : vector<16x32xf32>
    %c0_171 = arith.constant 0 : index
    %c0_172 = arith.constant 0 : index
    %332 = vector.load %arg20[%c0_171, %c0_172] : memref<32x32xbf16, #tpu.memory_space<vmem>>, vector<32x32xbf16>
    %c0_173 = arith.constant 0 : index
    %c0_174 = arith.constant 0 : index
    %333 = vector.load %arg21[%c0_173, %c0_174] : memref<1x32xf32, #tpu.memory_space<vmem>>, vector<1x32xf32>
    %334 = arith.truncf %331 : vector<16x32xf32> to vector<16x32xbf16>
    %cst_175 = arith.constant dense<0.000000e+00> : vector<16x32xf32>
    %335 = tpu.matmul %334, %332, %cst_175 {dimension_numbers = #tpu.dot_dimension_numbers<[1], [0], [0], [1], [0, 0, 1, 1], [], []>} : vector<16x32xbf16>, vector<32x32xbf16>, vector<16x32xf32> -> vector<16x32xf32>
    %336 = vector.broadcast %333 : vector<1x32xf32> to vector<16x32xf32>
    %337 = arith.addf %335, %336 : vector<16x32xf32>
    %338 = math.tanh %337 : vector<16x32xf32>
    %c0_176 = arith.constant 0 : index
    %c0_177 = arith.constant 0 : index
    %339 = vector.load %arg22[%c0_176, %c0_177] : memref<32x128xbf16, #tpu.memory_space<vmem>>, vector<32x128xbf16>
    %c0_178 = arith.constant 0 : index
    %c0_179 = arith.constant 0 : index
    %340 = vector.load %arg23[%c0_178, %c0_179] : memref<1x128xf32, #tpu.memory_space<vmem>>, vector<1x128xf32>
    %341 = arith.truncf %338 : vector<16x32xf32> to vector<16x32xbf16>
    %cst_180 = arith.constant dense<0.000000e+00> : vector<16x128xf32>
    %342 = tpu.matmul %341, %339, %cst_180 {dimension_numbers = #tpu.dot_dimension_numbers<[1], [0], [0], [1], [0, 0, 1, 1], [], []>} : vector<16x32xbf16>, vector<32x128xbf16>, vector<16x128xf32> -> vector<16x128xf32>
    %343 = vector.broadcast %340 : vector<1x128xf32> to vector<16x128xf32>
    %344 = arith.addf %342, %343 : vector<16x128xf32>
    %c0_181 = arith.constant 0 : index
    %c0_182 = arith.constant 0 : index
    %345 = vector.load %arg24[%c0_181, %c0_182] : memref<16x128xf32, #tpu.memory_space<vmem>>, vector<16x128xf32>
    tpu.vector_store %arg24[%c0_181, %c0_182], %344 {strides = array<i32>} : memref<16x128xf32, #tpu.memory_space<vmem>>, vector<16x128xf32>,
    return
  }
}

</mosaic_0001>

<bundles_post_ra>
// kernel: bert_class_forward.1
= control target key start
LH: loop header
LB: loop body
LE: loop exit
PB: predicated region body
PF: predicated region fallthrough
CT: control target
= control target key end

     0   :  { %vm82_vm0 = vcmask 261120   ;;  %v2794_v4 = vmov 32.0   ;;  %vm560_vm8 = vcmask 130048   ;;  %vm713_vm9 = vcmask 1043456   ;;  %s3470_s0 = inlined_call_operand.vmem [shape: f32[16,32], index: 0, kind: input, shape index: {}]   ;;  %s3471_s2 = inlined_call_operand.vmem [shape: f32[1,32], index: 2, kind: input, shape index: {}]   ;;  %s3472_s3 = inlined_call_operand.vmem [shape: f32[1,32], index: 3, kind: input, shape index: {}]   ;;  %s3473_s5 = inlined_call_operand.vmem [shape: f32[2,4,1,16], index: 5, kind: input, shape index: {}]   ;;  %s3474_s4 = inlined_call_operand.vmem [shape: bf16[2,4,32,16], index: 4, kind: input, shape index: {}]   ;;  %s3475_s6 = inlined_call_operand.vmem [shape: bf16[2,4,32,16], index: 6, kind: input, shape index: {}]   ;;  %s3476_s8 = inlined_call_operand.vmem [shape: bf16[2,4,32,16], index: 8, kind: input, shape index: {}]   ;;  %s3477_s7 = inlined_call_operand.vmem [shape: f32[2,4,1,16], index: 7, kind: input, shape index: {}]   ;;  %s3478_s9 = inlined_call_operand.vmem [shape: f32[2,4,1,16], index: 9, kind: input, shape index: {}]   ;;  %s3479_s1 = inlined_call_operand.vmem [shape: f32[4,1,8], index: 1, kind: input, shape index: {}]   ;;  %s3480_s10 = inlined_call_operand.vmem [shape: bf16[2,4,16,32], index: 10, kind: input, shape index: {}]   ;;  %s3481_s11 = inlined_call_operand.vmem [shape: f32[2,1,32], index: 11, kind: input, shape index: {}]   ;;  %s3482_s12 = inlined_call_operand.vmem [shape: f32[2,1,32], index: 12, kind: input, shape index: {}]   ;;  %s3483_s13 = inlined_call_operand.vmem [shape: f32[2,1,32], index: 13, kind: input, shape index: {}]   ;;  %s3484_s15 = inlined_call_operand.vmem [shape: f32[2,1,64], index: 15, kind: input, shape index: {}]   ;;  %s3485_s14 = inlined_call_operand.vmem [shape: bf16[2,32,64], index: 14, kind: input, shape index: {}]   ;;  %s3486_s17 = inlined_call_operand.vmem [shape: f32[2,1,32], index: 17, kind: input, shape index: {}]   ;;  %s3487_s16 = inlined_call_operand.vmem [shape: bf16[2,64,32], index: 16, kind: input, shape index: {}]   ;;  %s3488_s18 = inlined_call_operand.vmem [shape: f32[2,1,32], index: 18, kind: input, shape index: {}]   ;;  %s3489_s19 = inlined_call_operand.vmem [shape: f32[2,1,32], index: 19, kind: input, shape index: {}]   ;;  %s3490_s21 = inlined_call_operand.vmem [shape: f32[1,32], index: 21, kind: input, shape index: {}]   ;;  %s3491_s20 = inlined_call_operand.vmem [shape: bf16[32,32], index: 20, kind: input, shape index: {}]   ;;  %s3492_s23 = inlined_call_operand.vmem [shape: f32[1,128], index: 23, kind: input, shape index: {}]   ;;  %s3493_s22 = inlined_call_operand.vmem [shape: bf16[32,128], index: 22, kind: input, shape index: {}]   ;;  %s3494_s24 = inlined_call_operand.vmem [shape: f32[16,128], index: 24, kind: output, shape index: {}]  }
   0x1   :  { %3502 = sst [smem:[#allocation2_spill]] %s3470_s0  ;;  %2728 = vrcp.f32 %v2794_v4  ;;  %vm657_vm10 = vcmask 64512  }
   0x2   :  { %3503 = sst [smem:[#allocation3_spill]] %s3471_s2 }
   0x3   :  { %3504 = sst [smem:[#allocation4_spill]] %s3472_s3 }
   0x4   :  { %3505 = sst [smem:[#allocation5_spill]] %s3473_s5 }
   0x5   :  { %3506 = sst [smem:[#allocation6_spill]] %s3474_s4 }
   0x6   :  { %3507 = sst [smem:[#allocation7_spill]] %s3475_s6 }
   0x7   :  { %3508 = sst [smem:[#allocation8_spill]] %s3476_s8  ;;  %v2729_v5 = vpop.eup %2728 }
   0x8   :  { %3509 = sst [smem:[#allocation9_spill]] %s3477_s7  ;;  %v90_v6 = vmul.f32 32.0, %v2729_v5  ;;  %vm94_vm1 = vweird.f32 %v2729_v5 }
   0x9   :  { %3510 = sst [smem:[#allocation10_spill]] %s3478_s9 }
   0xa   :  { %s3511_s27 = sld [smem:[#allocation2_spill]]  ;;  %v91_v7 = vsub.f32 1.0, %v90_v6 }
   0xb   :  { %s3512_s0 = sld [smem:[#allocation6_spill]] }
   0xc   :  { %v92_v8 = vmul.f32 %v2729_v5, %v91_v7  ;;  %s3513_s5 = sld [smem:[#allocation7_spill]] }
   0xd   :  { %s3514_s2 = sld [smem:[#allocation3_spill]] }
   0xe   :  { %v93_v9 = vadd.f32 %v2729_v5, %v92_v8  ;;  %s3516_s3 = sld [smem:[#allocation8_spill]] }
   0xf   :  { %s3517_s9 = sld [smem:[#allocation9_spill]] }
  0x10   :  { %v79_v0 = vld [vmem:[%s3511_s27 + $0x8] sm:$0xff]  ;;  %v78_v2 = vld [vmem:[%s3511_s27] sm:$0xff]  ;;  %v2928_v10 = vsel %vm94_vm1, %v2729_v5, %v93_v9  ;;  %s3515_s27 = sld [smem:[#allocation4_spill]] }
  0x11   :  { %v86_v1 = vsel %vm82_vm0, %v79_v0, 0.0  ;;  %v83_v3 = vsel %vm82_vm0, %v78_v2, 0.0  ;;  %v2614_v21 = vld [vmem:[%s3512_s0 + $0x28] sm:$0xff]  ;;  %v2616_v22 = vld [vmem:[%s3512_s0 + $0x38] sm:$0xff]  ;;  %v2613_v23 = vld [vmem:[%s3512_s0 + $0x20] sm:$0xff]  ;;  %s3518_s7 = sld [smem:[#allocation5_spill]] }
  0x12   :  { %87 = vadd.xlane.f32.xlu0 %v86_v1  ;;  %256 = vmatpush.bf16.msra.mxu2 %v2614_v21  ;;  %v2615_v24 = vld [vmem:[%s3512_s0 + $0x30] sm:$0xff]  ;;  %v2610_v25 = vld [vmem:[%s3512_s0 + $0x8] sm:$0xff]  ;;  %v2612_v26 = vld [vmem:[%s3512_s0 + $0x18] sm:$0xff]  ;;  %s3519_s8 = sld [smem:[#allocation10_spill]] }
  0x13   :  { %281 = vmatpush.bf16.msra.mxu3 %v2616_v22  ;;  %203 = vmatpush.bf16.msra.mxu0 %v2610_v25  ;;  %v2609_v29 = vld [vmem:[%s3512_s0] sm:$0xff]  ;;  %v2611_v30 = vld [vmem:[%s3512_s0 + $0x10] sm:$0xff]  ;;  %v2622_v32 = vld [vmem:[%s3513_s5 + $0x28] sm:$0xff] }
  0x14   :  { %228 = vmatpush.bf16.msra.mxu1 %v2612_v26  ;;  %v2624_v33 = vld [vmem:[%s3513_s5 + $0x38] sm:$0xff]  ;;  %v2621_v35 = vld [vmem:[%s3513_s5 + $0x20] sm:$0xff]  ;;  %v2623_v36 = vld [vmem:[%s3513_s5 + $0x30] sm:$0xff] }
  0x15   :  { %v2618_v42 = vld [vmem:[%s3513_s5 + $0x8] sm:$0xff]  ;;  %v2620_v43 = vld [vmem:[%s3513_s5 + $0x18] sm:$0xff]  ;;  %v2617_v45 = vld [vmem:[%s3513_s5] sm:$0xff] }
  0x16   :  { %257 = vmatpush.bf16.msra.mxu2 %v2613_v23  ;;  %v2619_v46 = vld [vmem:[%s3513_s5 + $0x10] sm:$0xff]  ;;  %v2682_v51 = vld [vmem:[%s3514_s2] ss:$0 sm:$0xff]  ;;  %v2630_v61 = vld [vmem:[%s3516_s3 + $0x28] sm:$0xff] }
  0x17   :  { %282 = vmatpush.bf16.msra.mxu3 %v2615_v24  ;;  %204 = vmatpush.bf16.msra.mxu0 %v2609_v29  ;;  %v2683_v54 = vld [vmem:[%s3515_s27] ss:$0 sm:$0xff]  ;;  %v2632_v62 = vld [vmem:[%s3516_s3 + $0x38] sm:$0xff]  ;;  %v2626_v6 = vld [vmem:[%s3516_s3 + $0x8] sm:$0xff] }
  0x18   :  { %229 = vmatpush.bf16.msra.mxu1 %v2611_v30  ;;  %v2628_v7 = vld [vmem:[%s3516_s3 + $0x18] sm:$0xff]  ;;  %v2625_v9 = vld [vmem:[%s3516_s3] sm:$0xff] }
  0x19   :  { %v2689_v21 = vld [vmem:[%s3517_s9 + $0x3] ss:$0 sm:$0xff]  ;;  %v2690_v22 = vld [vmem:[%s3517_s9] ss:$0 sm:$0xff]  ;;  %v2691_v23 = vld [vmem:[%s3517_s9 + $0x1] ss:$0 sm:$0xff] }
  0x1a   :  { %84 = vadd.xlane.f32.xlu0 %v83_v3  ;;  %388 = vmatpush.bf16.msrb.mxu2 %v2622_v32  ;;  %v2631_v3 = vld [vmem:[%s3516_s3 + $0x30] sm:$0xff]  ;;  %v2684_v30 = vld [vmem:[%s3518_s7 + $0x2] ss:$0 sm:$0xff] }
  0x1b   :  { %413 = vmatpush.bf16.msrb.mxu3 %v2624_v33  ;;  %338 = vmatpush.bf16.msrb.mxu0 %v2618_v42 }
  0x1c   :  { %363 = vmatpush.bf16.msrb.mxu1 %v2620_v43 }
  0x1e   :  { %389 = vmatpush.bf16.msrb.mxu2 %v2621_v35 }
  0x1f   :  { %414 = vmatpush.bf16.msrb.mxu3 %v2623_v36  ;;  %339 = vmatpush.bf16.msrb.mxu0 %v2617_v45  ;;  %v2686_v36 = vld [vmem:[%s3518_s7] ss:$0 sm:$0xff] }
  0x20   :  { %364 = vmatpush.bf16.msrb.mxu1 %v2619_v46 }
  0x85   :  { %v88_v11 = vpop.xlane.xlu0 %87 }
  0x86   :  { %v97_v12 = vmul.f32 %v2928_v10, %v88_v11  ;;  %v2627_v11 = vld [vmem:[%s3516_s3 + $0x10] sm:$0xff] }
  0x88   :  { %v2931_v13 = vsub.f32 %v79_v0, %v97_v12 }
  0x8a   :  { %v101_v14 = vmul.f32 %v2931_v13, %v2931_v13 }
  0x8c   :  { %v105_v15 = vsel %vm82_vm0, %v101_v14, 0.0 }
  0x8d   :  { %106 = vadd.xlane.f32.xlu1 %v105_v15  ;;  %v85_v16 = vpop.xlane.xlu0 %84 }
  0x8e   :  { %v96_v17 = vmul.f32 %v2928_v10, %v85_v16 }
  0x90   :  { %v2937_v18 = vsub.f32 %v78_v2, %v96_v17  ;;  %v2629_v2 = vld [vmem:[%s3516_s3 + $0x20] sm:$0xff] }
  0x92   :  { %v100_v19 = vmul.f32 %v2937_v18, %v2937_v18 }
  0x94   :  { %v102_v20 = vsel %vm82_vm0, %v100_v19, 0.0 }
  0x95   :  { %103 = vadd.xlane.f32.xlu1 %v102_v20  ;;  %v2688_v20 = vld [vmem:[%s3517_s9 + $0x2] ss:$0 sm:$0xff] }
 0x100   :  { %v107_v27 = vpop.xlane.xlu1 %106 }
 0x101   :  { %v109_v28 = vmul.f32 %v107_v27, %v2928_v10 }
 0x103   :  { %v111_v31 = vadd.f32 1e-12, %v109_v28 }
 0x105   :  { %2730 = vrsqrt.f32 %v111_v31  ;;  %vm128_vm3 = vweird.f32 %v111_v31 }
 0x108   :  { %v104_v34 = vpop.xlane.xlu1 %103 }
 0x109   :  { %v108_v37 = vmul.f32 %v104_v34, %v2928_v10 }
 0x10b   :  { %v2731_v38 = vpop.eup %2730  ;;  %v110_v39 = vadd.f32 1e-12, %v108_v37  ;;  %v2687_v37 = vld [vmem:[%s3518_s7 + $0x1] ss:$0 sm:$0xff] }
 0x10c   :  { %v123_v40 = vmul.f32 %v2731_v38, %v111_v31  ;;  %vm129_vm2 = vweird.f32 %v2731_v38  ;;  %v2685_v31 = vld [vmem:[%s3518_s7 + $0x3] ss:$0 sm:$0xff] }
 0x10d   :  { %2732 = vrsqrt.f32 %v110_v39  ;;  %vm130_vm4 = vmor %vm128_vm3, %vm129_vm2  ;;  %vm118_vm5 = vweird.f32 %v110_v39  ;;  %vm1046_vm2 = vcmask 523264  }
 0x10e   :  { %v124_v41 = vmul.f32 %v2731_v38, %v123_v40 }
 0x110   :  { %v125_v44 = vmul.f32 0.5, %v124_v41 }
 0x112   :  { %v126_v47 = vsub.f32 1.5, %v125_v44 }
 0x113   :  { %v2733_v48 = vpop.eup %2732 }
 0x114   :  { %v127_v49 = vmul.f32 %v2731_v38, %v126_v47  ;;  %v113_v50 = vmul.f32 %v2733_v48, %v110_v39  ;;  %vm119_vm6 = vweird.f32 %v2733_v48 }
 0x115   :  { %vm120_vm7 = vmor %vm118_vm5, %vm119_vm6 }
 0x116   :  { %v131_v52 = vsel %vm130_vm4, %v2731_v38, %v127_v49  ;;  %v114_v53 = vmul.f32 %v2733_v48, %v113_v50 }
 0x117   :  { %v133_v55 = vmul.f32 %v131_v52, %v2931_v13 }
 0x118   :  { %v115_v56 = vmul.f32 0.5, %v114_v53 }
 0x119   :  { %v138_v57 = vmul.f32 %v2682_v51, %v133_v55  ;;  %v2693_v55 = vld [vmem:[%s3519_s8 + $0x3] ss:$0 sm:$0xff] }
 0x11a   :  { %v116_v58 = vsub.f32 1.5, %v115_v56 }
 0x11b   :  { %v2999_v59 = vadd.f32 %v2683_v54, %v138_v57 }
 0x11c   :  { %v117_v60 = vmul.f32 %v2733_v48, %v116_v58  ;;  %v2694_v58 = vld [vmem:[%s3519_s8] ss:$0 sm:$0xff] }
 0x11d   :  { %v149_v63 = vpack.c.bf16 %v2999_v59, %v2999_v59 }
 0x11e   :  { %v121_v0 = vsel %vm120_vm7, %v2733_v48, %v117_v60  ;;  %v2695_v60 = vld [vmem:[%s3519_s8 + $0x1] ss:$0 sm:$0xff] }
 0x11f   :  { %v132_v1 = vmul.f32 %v121_v0, %v2937_v18  ;;  %2206 = vmatmul.msk.bf16.vlgmr.msra.gmra.mxu2 %vm82_vm0, %v149_v63  ;;  %2215 = vmatmul.msk.bf16.vlgmr.msra.gmra.mxu3 %vm82_vm0, %v149_v63 }
 0x120   :  { %520 = vmatpush.bf16.msra.mxu2 %v2630_v61  ;;  %545 = vmatpush.bf16.msra.mxu3 %v2632_v62 }
 0x121   :  { %v137_v4 = vmul.f32 %v2682_v51, %v132_v1 }
 0x123   :  { %v3018_v5 = vadd.f32 %v2683_v54, %v137_v4  ;;  %v2692_v54 = vld [vmem:[%s3519_s8 + $0x2] ss:$0 sm:$0xff] }
 0x124   :  { %521 = vmatpush.bf16.msra.mxu2 %v2629_v2  ;;  %546 = vmatpush.bf16.msra.mxu3 %v2631_v3 }
 0x125   :  { %v148_v8 = vpack.c.bf16 %v3018_v5, %v3018_v5 }
 0x127   :  { %2188 = vmatmul.msk.bf16.vlgmr.msra.gmra.mxu0 %vm82_vm0, %v148_v8  ;;  %2197 = vmatmul.msk.bf16.vlgmr.msra.gmra.mxu1 %vm82_vm0, %v148_v8 }
 0x128   :  { %470 = vmatpush.bf16.msra.mxu0 %v2626_v6  ;;  %495 = vmatpush.bf16.msra.mxu1 %v2628_v7 }
 0x12c   :  { %471 = vmatpush.bf16.msra.mxu0 %v2625_v9  ;;  %496 = vmatpush.bf16.msra.mxu1 %v2627_v11 }
 0x12f   :  { %2242 = vmatmul.msk.bf16.vlgmr.msrb.gmra.mxu2 %vm82_vm0, %v149_v63  ;;  %2251 = vmatmul.msk.bf16.vlgmr.msrb.gmra.mxu3 %vm82_vm0, %v149_v63 }
 0x137   :  { %2224 = vmatmul.msk.bf16.vlgmr.msrb.gmra.mxu0 %vm82_vm0, %v148_v8  ;;  %2233 = vmatmul.msk.bf16.vlgmr.msrb.gmra.mxu1 %vm82_vm0, %v148_v8 }
 0x13f   :  { %2278 = vmatmul.msk.bf16.vlgmr.msra.gmra.mxu2 %vm82_vm0, %v149_v63  ;;  %2287 = vmatmul.msk.bf16.vlgmr.msra.gmra.mxu3 %vm82_vm0, %v149_v63 }
 0x147   :  { %2260 = vmatmul.msk.bf16.vlgmr.msra.gmra.mxu0 %vm82_vm0, %v148_v8  ;;  %2269 = vmatmul.msk.bf16.vlgmr.msra.gmra.mxu1 %vm82_vm0, %v148_v8 }
 0x1a2   :  { %v259_v12 = vpop.f32.mrf.mxu2  ;;  %v284_v13 = vpop.f32.mrf.mxu3 }
 0x1a3   :  { %v260_v42 = vadd.f32 %v2684_v30, %v259_v12  ;;  %v285_v43 = vadd.f32 %v2685_v31, %v284_v13 }
 0x1a4   :  { %v206_v14 = vpop.f32.mrf.mxu0  ;;  %v231_v15 = vpop.f32.mrf.mxu1 }
 0x1a5   :  { %v207_v48 = vadd.f32 %v2686_v36, %v206_v14  ;;  %v232_v49 = vadd.f32 %v2687_v37, %v231_v15  ;;  %v554_v52 = vpack.c.bf16 %v260_v42, %v260_v42  ;;  %v555_v53 = vpack.c.bf16 %v285_v43, %v285_v43 }
 0x1a7   :  { %v552_v56 = vpack.c.bf16 %v207_v48, %v207_v48  ;;  %v553_v57 = vpack.c.bf16 %v232_v49, %v232_v49 }
 0x1aa   :  { %v261_v16 = vpop.f32.mrf.mxu2  ;;  %v286_v17 = vpop.f32.mrf.mxu3 }
 0x1ac   :  { %v208_v18 = vpop.f32.mrf.mxu0  ;;  %v233_v19 = vpop.f32.mrf.mxu1 }
 0x1ad   :  { %v3095_v19 = vld [vmem:[%s3479_s1 + $0x1] ss:$0 sm:$0xff] }
 0x1b2   :  { %v391_v24 = vpop.f32.mrf.mxu2  ;;  %v416_v25 = vpop.f32.mrf.mxu3 }
 0x1b3   :  { %v392_v26 = vadd.f32 %v2688_v20, %v391_v24  ;;  %v417_v27 = vadd.f32 %v2689_v21, %v416_v25  ;;  %v3100_v20 = vld [vmem:[%s3479_s1] ss:$0 sm:$0xff] }
 0x1b4   :  { %v341_v28 = vpop.f32.mrf.mxu0  ;;  %v366_v29 = vpop.f32.mrf.mxu1 }
 0x1b5   :  { %v558_v32 = vpack.c.bf16 %v392_v26, %v392_v26  ;;  %v559_v33 = vpack.c.bf16 %v417_v27, %v417_v27  ;;  %v342_v34 = vadd.f32 %v2690_v22, %v341_v28  ;;  %v367_v35 = vadd.f32 %v2691_v23, %v366_v29  ;;  %v3107_v27 = vld [vmem:[%s3479_s1 + $0x2] ss:$0 sm:$0xff] }
 0x1b7   :  { %v603_v38 = vsel %vm560_vm8, %v558_v32, 0  ;;  %v622_v39 = vsel %vm560_vm8, %v559_v33, 0  ;;  %v556_v40 = vpack.c.bf16 %v342_v34, %v342_v34  ;;  %v557_v41 = vpack.c.bf16 %v367_v35, %v367_v35 }
 0x1b8   :  { %612 = vmatpush.bf16.xpose.msrb.mxu2 %v603_v38  ;;  %631 = vmatpush.bf16.xpose.msrb.mxu3 %v622_v39  ;;  %v3116_v38 = vld [vmem:[%s3479_s1 + $0x3] ss:$0 sm:$0xff] }
 0x1b9   :  { %v565_v44 = vsel %vm560_vm8, %v556_v40, 0  ;;  %v584_v45 = vsel %vm560_vm8, %v557_v41, 0 }
 0x1ba   :  { %v393_v46 = vpop.f32.mrf.mxu2  ;;  %v418_v47 = vpop.f32.mrf.mxu3  ;;  %574 = vmatpush.bf16.xpose.msrb.mxu0 %v565_v44  ;;  %593 = vmatpush.bf16.xpose.msrb.mxu1 %v584_v45 }
 0x1bc   :  { %v343_v50 = vpop.f32.mrf.mxu0  ;;  %v368_v51 = vpop.f32.mrf.mxu1 }
 0x1bf   :  { %2290 = vmatmul.msk.bf16.vlgmr.msrb.gmra.mxu2 %vm560_vm8, %v554_v52  ;;  %2291 = vmatmul.msk.bf16.vlgmr.msrb.gmra.mxu3 %vm560_vm8, %v555_v53 }
 0x1c1   :  { %2288 = vmatmul.msk.bf16.vlgmr.msrb.gmra.mxu0 %vm560_vm8, %v552_v56  ;;  %2289 = vmatmul.msk.bf16.vlgmr.msrb.gmra.mxu1 %vm560_vm8, %v553_v57 }
 0x1c2   :  { %v523_v61 = vpop.f32.mrf.mxu2  ;;  %v548_v62 = vpop.f32.mrf.mxu3 }
 0x1c3   :  { %v524_v63 = vadd.f32 %v2692_v54, %v523_v61  ;;  %v549_v0 = vadd.f32 %v2693_v55, %v548_v62 }
 0x1c4   :  { %v473_v1 = vpop.f32.mrf.mxu0  ;;  %v498_v2 = vpop.f32.mrf.mxu1 }
 0x1c5   :  { %v708_v3 = vpack.c.bf16 %v524_v63, %v524_v63  ;;  %v709_v4 = vpack.c.bf16 %v549_v0, %v549_v0  ;;  %v474_v6 = vadd.f32 %v2694_v58, %v473_v1  ;;  %v499_v7 = vadd.f32 %v2695_v60, %v498_v2 }
 0x1c7   :  { %v753_v8 = vsel %vm713_vm9, %v708_v3, 0  ;;  %v772_v9 = vsel %vm713_vm9, %v709_v4, 0  ;;  %v706_v11 = vpack.c.bf16 %v474_v6, %v474_v6  ;;  %v707_v12 = vpack.c.bf16 %v499_v7, %v499_v7 }
 0x1c8   :  { %762 = vmatpush.bf16.msra.mxu2 %v753_v8  ;;  %781 = vmatpush.bf16.msra.mxu3 %v772_v9 }
 0x1c9   :  { %v715_v13 = vsel %vm713_vm9, %v706_v11, 0  ;;  %v734_v14 = vsel %vm713_vm9, %v707_v12, 0 }
 0x1ca   :  { %v525_v15 = vpop.f32.mrf.mxu2  ;;  %v550_v16 = vpop.f32.mrf.mxu3  ;;  %724 = vmatpush.bf16.msra.mxu0 %v715_v13  ;;  %743 = vmatpush.bf16.msra.mxu1 %v734_v14 }
 0x1cc   :  { %v475_v17 = vpop.f32.mrf.mxu0  ;;  %v500_v18 = vpop.f32.mrf.mxu1 }
 0x1cd   :  { %v2633_v18 = vld [vmem:[%s3480_s10] sm:$0xff] }
 0x1ce   :  { %815 = vmatpush.bf16.msrb.mxu0 %v2633_v18 }
 0x23e   :  { %v576_v21 = vpop.f32.mrf.mxu0  ;;  %v595_v22 = vpop.f32.mrf.mxu1 }
 0x23f   :  { %v637_v23 = vmul.f32 0.25, %v576_v21  ;;  %v638_v24 = vmul.f32 0.25, %v595_v22  ;;  %v2635_v21 = vld [vmem:[%s3480_s10 + $0x10] sm:$0xff]  ;;  %v2634_v22 = vld [vmem:[%s3480_s10 + $0x8] sm:$0xff] }
 0x240   :  { %859 = vmatpush.bf16.msrb.mxu2 %v2635_v21  ;;  %837 = vmatpush.bf16.msrb.mxu1 %v2634_v22 }
 0x241   :  { %v654_v25 = vadd.f32 %v3095_v19, %v638_v24  ;;  %v653_v26 = vadd.f32 %v3100_v20, %v637_v23  ;;  %v2636_v23 = vld [vmem:[%s3480_s10 + $0x18] sm:$0xff] }
 0x242   :  { %v614_v28 = vpop.f32.mrf.mxu2  ;;  %v633_v29 = vpop.f32.mrf.mxu3  ;;  %881 = vmatpush.bf16.msrb.mxu3 %v2636_v23 }
 0x243   :  { %v639_v30 = vmul.f32 0.25, %v614_v28  ;;  %v661_v31 = vsel %vm657_vm10, %v654_v25, -inf  ;;  %v658_v32 = vsel %vm657_vm10, %v653_v26, -inf  ;;  %v640_v36 = vmul.f32 0.25, %v633_v29 }
 0x244   :  { %662 = vmax.xlane.f32.xlu1 %v661_v31  ;;  %659 = vmax.xlane.f32.xlu0 %v658_v32 }
 0x245   :  { %v655_v33 = vadd.f32 %v3107_v27, %v639_v30  ;;  %v656_v41 = vadd.f32 %v3116_v38, %v640_v36 }
 0x246   :  { %v578_v34 = vpop.f32.mrf.mxu0  ;;  %v597_v35 = vpop.f32.mrf.mxu1 }
 0x247   :  { %v664_v37 = vsel %vm657_vm10, %v655_v33, -inf  ;;  %v667_v42 = vsel %vm657_vm10, %v656_v41, -inf }
 0x248   :  { %665 = vmax.xlane.f32.xlu2 %v664_v37 }
 0x24a   :  { %v616_v39 = vpop.f32.mrf.mxu2  ;;  %v635_v40 = vpop.f32.mrf.mxu3 }
 0x24b   :  { %v2700_v40 = vld [vmem:[%s3481_s11] ss:$0 sm:$0xff] }
 0x250   :  { %668 = vmax.xlane.f32.xlu2 %v667_v42 }
 0x2b7   :  { %v660_v43 = vpop.xlane.xlu0 %659  ;;  %v663_v46 = vpop.xlane.xlu1 %662 }
 0x2b8   :  { %v670_v44 = vsub.f32 %v653_v26, %v660_v43  ;;  %v671_v49 = vsub.f32 %v654_v25, %v663_v46 }
 0x2ba   :  { %v674_v45 = vmul.f32 1.442695, %v670_v44  ;;  %v676_v51 = vmul.f32 1.442695, %v671_v49 }
 0x2bb   :  { %v666_v47 = vpop.xlane.xlu2 %665 }
 0x2bc   :  { %v672_v48 = vsub.f32 %v655_v33, %v666_v47  ;;  %2734 = vpow2.f32 %v674_v45 }
 0x2be   :  { %v678_v50 = vmul.f32 1.442695, %v672_v48 }
 0x2c0   :  { %2736 = vpow2.f32 %v678_v50 }
 0x2c1   :  { %2738 = vpow2.f32 %v676_v51 }
 0x2c2   :  { %v2735_v52 = vpop.eup %2734 }
 0x2c3   :  { %v669_v53 = vpop.xlane.xlu2 %668  ;;  %v682_v55 = vsel %vm657_vm10, %v2735_v52, 0.0 }
 0x2c4   :  { %v673_v54 = vsub.f32 %v656_v41, %v669_v53  ;;  %683 = vadd.xlane.f32.xlu1 %v682_v55 }
 0x2c6   :  { %v2737_v56 = vpop.eup %2736  ;;  %v680_v57 = vmul.f32 1.442695, %v673_v54 }
 0x2c7   :  { %v688_v58 = vsel %vm657_vm10, %v2737_v56, 0.0  ;;  %v2739_v60 = vpop.eup %2738 }
 0x2c8   :  { %2740 = vpow2.f32 %v680_v57  ;;  %689 = vadd.xlane.f32.xlu2 %v688_v58  ;;  %v685_v62 = vsel %vm657_vm10, %v2739_v60, 0.0 }
 0x2ce   :  { %v2741_v61 = vpop.eup %2740 }
 0x2cf   :  { %v691_v63 = vsel %vm657_vm10, %v2741_v61, 0.0 }
 0x2d0   :  { %686 = vadd.xlane.f32.xlu2 %v685_v62  ;;  %692 = vadd.xlane.f32.xlu0 %v691_v63 }
 0x337   :  { %v684_v0 = vpop.xlane.xlu1 %683 }
 0x338   :  { %2742 = vrcp.f32 %v684_v0 }
 0x33b   :  { %v690_v1 = vpop.xlane.xlu2 %689 }
 0x33c   :  { %2744 = vrcp.f32 %v690_v1 }
 0x33e   :  { %v2743_v2 = vpop.eup %2742 }
 0x33f   :  { %v698_v3 = vmul.f32 %v2743_v2, %v2735_v52 }
 0x341   :  { %v702_v6 = vpack.c.bf16 %v698_v3, %v698_v3  ;;  %v2638_v3 = vld [vmem:[%s3485_s14 + $0x8] sm:$0xff] }
 0x342   :  { %v2745_v4 = vpop.eup %2744 }
 0x343   :  { %v700_v7 = vmul.f32 %v2745_v4, %v2737_v56  ;;  %v687_v8 = vpop.xlane.xlu2 %686  ;;  %v693_v9 = vpop.xlane.xlu0 %692  ;;  %2292 = vmatmul.msk.bf16.vlgmr.msra.gmra.mxu0 %vm657_vm10, %v702_v6  ;;  %v2637_v4 = vld [vmem:[%s3485_s14] sm:$0xff] }
 0x344   :  { %2746 = vrcp.f32 %v687_v8  ;;  %983 = vmatpush.bf16.msra.mxu0 %v2638_v3 }
 0x345   :  { %v704_v11 = vpack.c.bf16 %v700_v7, %v700_v7  ;;  %2748 = vrcp.f32 %v693_v9 }
 0x347   :  { %2294 = vmatmul.msk.bf16.vlgmr.msra.gmra.mxu2 %vm657_vm10, %v704_v11 }
 0x348   :  { %984 = vmatpush.bf16.msra.mxu0 %v2637_v4 }
 0x34a   :  { %v2747_v12 = vpop.eup %2746 }
 0x34b   :  { %v2749_v13 = vpop.eup %2748  ;;  %v699_v14 = vmul.f32 %v2747_v12, %v2739_v60 }
 0x34c   :  { %v701_v15 = vmul.f32 %v2749_v13, %v2741_v61 }
 0x34d   :  { %v703_v16 = vpack.c.bf16 %v699_v14, %v699_v14 }
 0x34e   :  { %v705_v17 = vpack.c.bf16 %v701_v15, %v701_v15 }
 0x34f   :  { %2293 = vmatmul.msk.bf16.vlgmr.msra.gmra.mxu1 %vm657_vm10, %v703_v16 }
 0x350   :  { %2295 = vmatmul.msk.bf16.vlgmr.msra.gmra.mxu3 %vm657_vm10, %v705_v17 }
 0x3c0   :  { %v726_v24 = vpop.f32.mrf.mxu0 }
 0x3c1   :  { %v787_v25 = vpack.c.bf16 %v726_v24, %v726_v24  ;;  %v2701_v24 = vld [vmem:[%s3482_s12] ss:$0 sm:$0xff] }
 0x3c3   :  { %2300 = vmatmul.msk.bf16.vlgmr.msrb.gmra.mxu0 %vm560_vm8, %v787_v25 }
 0x3c8   :  { %v728_v26 = vpop.f32.mrf.mxu0 }
 0x3ca   :  { %v764_v28 = vpop.f32.mrf.mxu2 }
 0x3cb   :  { %v789_v29 = vpack.c.bf16 %v764_v28, %v764_v28 }
 0x3cc   :  { %v745_v30 = vpop.f32.mrf.mxu1 }
 0x3cd   :  { %v788_v31 = vpack.c.bf16 %v745_v30, %v745_v30  ;;  %2310 = vmatmul.msk.bf16.vlgmr.msrb.gmra.mxu2 %vm560_vm8, %v789_v29  ;;  %v2702_v29 = vld [vmem:[%s3483_s13] ss:$0 sm:$0xff] }
 0x3cf   :  { %2305 = vmatmul.msk.bf16.vlgmr.msrb.gmra.mxu1 %vm560_vm8, %v788_v31 }
 0x3d2   :  { %v766_v32 = vpop.f32.mrf.mxu2 }
 0x3d3   :  { %v783_v33 = vpop.f32.mrf.mxu3 }
 0x3d4   :  { %v790_v34 = vpack.c.bf16 %v783_v33, %v783_v33  ;;  %v747_v35 = vpop.f32.mrf.mxu1 }
 0x3d6   :  { %2315 = vmatmul.msk.bf16.vlgmr.msrb.gmra.mxu3 %vm560_vm8, %v790_v34 }
 0x3db   :  { %v785_v36 = vpop.f32.mrf.mxu3 }
 0x3dc   :  { %v2642_v36 = vld [vmem:[%s3487_s16 + $0x18] sm:$0xff] }
 0x3dd   :  { %1054 = vmatpush.bf16.msra.mxu1 %v2642_v36  ;;  %v2654_v36 = vld [vmem:[%s3513_s5 + $0x58] sm:$0xff] }
 0x440   :  { %v817_v37 = vpop.f32.mrf.mxu0 }
 0x448   :  { %v819_v39 = vpop.f32.mrf.mxu0 }
 0x449   :  { %v2640_v39 = vld [vmem:[%s3487_s16 + $0x8] sm:$0xff] }
 0x44c   :  { %v839_v41 = vpop.f32.mrf.mxu1 }
 0x44d   :  { %v887_v42 = vadd.f32 %v839_v41, %v817_v37  ;;  %v2641_v37 = vld [vmem:[%s3487_s16 + $0x10] sm:$0xff]  ;;  %v2703_v41 = vld [vmem:[%s3484_s15] ss:$0 sm:$0xff] }
 0x44e   :  { %1055 = vmatpush.bf16.msra.mxu1 %v2641_v37 }
 0x44f   :  { %v893_v43 = vadd.f32 %v2700_v40, %v887_v42 }
 0x450   :  { %v861_v44 = vpop.f32.mrf.mxu2 }
 0x451   :  { %v895_v45 = vadd.f32 %v893_v43, %v3018_v5 }
 0x452   :  { %1056 = vmatpush.bf16.msra.mxu1 %v2640_v39  ;;  %v2651_v39 = vld [vmem:[%s3513_s5 + $0x40] sm:$0xff] }
 0x453   :  { %v899_v46 = vsel %vm82_vm0, %v895_v45, 0.0 }
 0x454   :  { %v841_v47 = vpop.f32.mrf.mxu1  ;;  %900 = vadd.xlane.f32.xlu0 %v899_v46 }
 0x458   :  { %v863_v48 = vpop.f32.mrf.mxu2 }
 0x459   :  { %v883_v49 = vpop.f32.mrf.mxu3 }
 0x45a   :  { %v888_v50 = vadd.f32 %v883_v49, %v861_v44 }
 0x45c   :  { %v894_v51 = vadd.f32 %v2700_v40, %v888_v50  ;;  %v2639_v40 = vld [vmem:[%s3487_s16] sm:$0xff] }
 0x45d   :  { %1057 = vmatpush.bf16.msra.mxu1 %v2639_v40  ;;  %v2653_v40 = vld [vmem:[%s3513_s5 + $0x50] sm:$0xff] }
 0x45e   :  { %v896_v52 = vadd.f32 %v894_v51, %v2999_v59 }
 0x460   :  { %v902_v53 = vsel %vm82_vm0, %v896_v52, 0.0 }
 0x461   :  { %903 = vadd.xlane.f32.xlu1 %v902_v53  ;;  %v885_v54 = vpop.f32.mrf.mxu3 }
 0x4c7   :  { %v901_v55 = vpop.xlane.xlu0 %900 }
 0x4c8   :  { %v905_v56 = vmul.f32 %v901_v55, %v2928_v10 }
 0x4ca   :  { %v907_v57 = vsub.f32 %v895_v45, %v905_v56 }
 0x4cc   :  { %v909_v58 = vmul.f32 %v907_v57, %v907_v57 }
 0x4ce   :  { %v911_v5 = vsel %vm82_vm0, %v909_v58, 0.0 }
 0x4cf   :  { %912 = vadd.xlane.f32.xlu2 %v911_v5 }
 0x4d4   :  { %v904_v60 = vpop.xlane.xlu1 %903 }
 0x4d5   :  { %v906_v61 = vmul.f32 %v904_v60, %v2928_v10 }
 0x4d7   :  { %v908_v62 = vsub.f32 %v896_v52, %v906_v61 }
 0x4d9   :  { %v910_v63 = vmul.f32 %v908_v62, %v908_v62 }
 0x4db   :  { %v914_v0 = vsel %vm82_vm0, %v910_v63, 0.0 }
 0x4dc   :  { %915 = vadd.xlane.f32.xlu0 %v914_v0 }
 0x542   :  { %v913_v59 = vpop.xlane.xlu2 %912 }
 0x543   :  { %v917_v1 = vmul.f32 %v913_v59, %v2928_v10  ;;  %v2704_v59 = vld [vmem:[%s3486_s17] ss:$0 sm:$0xff] }
 0x545   :  { %v919_v2 = vadd.f32 1e-12, %v917_v1 }
 0x547   :  { %2750 = vrsqrt.f32 %v919_v2  ;;  %vm927_vm12 = vweird.f32 %v919_v2 }
 0x54d   :  { %v2751_v6 = vpop.eup %2750 }
 0x54e   :  { %v922_v7 = vmul.f32 %v2751_v6, %v919_v2  ;;  %vm928_vm11 = vweird.f32 %v2751_v6 }
 0x54f   :  { %v916_v8 = vpop.xlane.xlu0 %915  ;;  %vm929_vm13 = vmor %vm927_vm12, %vm928_vm11 }
 0x550   :  { %v923_v9 = vmul.f32 %v2751_v6, %v922_v7  ;;  %v918_v11 = vmul.f32 %v916_v8, %v2928_v10 }
 0x552   :  { %v920_v12 = vadd.f32 1e-12, %v918_v11  ;;  %v924_v13 = vmul.f32 0.5, %v923_v9 }
 0x554   :  { %2752 = vrsqrt.f32 %v920_v12  ;;  %v925_v14 = vsub.f32 1.5, %v924_v13  ;;  %vm937_vm15 = vweird.f32 %v920_v12 }
 0x556   :  { %v926_v16 = vmul.f32 %v2751_v6, %v925_v14 }
 0x558   :  { %v930_v21 = vsel %vm929_vm13, %v2751_v6, %v926_v16 }
 0x559   :  { %v941_v25 = vmul.f32 %v930_v21, %v907_v57 }
 0x55a   :  { %v2753_v15 = vpop.eup %2752 }
 0x55b   :  { %v932_v17 = vmul.f32 %v2753_v15, %v920_v12  ;;  %vm938_vm14 = vweird.f32 %v2753_v15  ;;  %v946_v30 = vmul.f32 %v2701_v24, %v941_v25  ;;  %v2643_v25 = vld [vmem:[%s3512_s0 + $0x40] sm:$0xff] }
 0x55c   :  { %vm939_vm1 = vmor %vm937_vm15, %vm938_vm14 }
 0x55d   :  { %v933_v18 = vmul.f32 %v2753_v15, %v932_v17  ;;  %v951_v33 = vadd.f32 %v2702_v29, %v946_v30 }
 0x55f   :  { %v934_v22 = vmul.f32 0.5, %v933_v18 }
 0x561   :  { %v935_v23 = vsub.f32 1.5, %v934_v22 }
 0x563   :  { %v936_v26 = vmul.f32 %v2753_v15, %v935_v23  ;;  %v2644_v23 = vld [vmem:[%s3512_s0 + $0x48] sm:$0xff] }
 0x564   :  { %1179 = vmatpush.bf16.msra.mxu2 %v2644_v23 }
 0x565   :  { %v940_v28 = vsel %vm939_vm1, %v2753_v15, %v936_v26  ;;  %v2645_v26 = vld [vmem:[%s3512_s0 + $0x50] sm:$0xff] }
 0x566   :  { %v942_v31 = vmul.f32 %v940_v28, %v908_v62  ;;  %v2648_v28 = vld [vmem:[%s3512_s0 + $0x68] sm:$0xff] }
 0x567   :  { %1232 = vmatpush.bf16.msrb.mxu0 %v2648_v28  ;;  %v2712_v28 = vld [vmem:[%s3517_s9 + $0x5] ss:$0 sm:$0xff] }
 0x568   :  { %v947_v32 = vmul.f32 %v2701_v24, %v942_v31  ;;  %v2646_v24 = vld [vmem:[%s3512_s0 + $0x58] sm:$0xff]  ;;  %1180 = vmatpush.bf16.msra.mxu2 %v2643_v25 }
 0x569   :  { %1204 = vmatpush.bf16.msra.mxu3 %v2646_v24 }
 0x56a   :  { %v952_v34 = vadd.f32 %v2702_v29, %v947_v32  ;;  %v2650_v29 = vld [vmem:[%s3512_s0 + $0x78] sm:$0xff]  ;;  %v2647_v32 = vld [vmem:[%s3512_s0 + $0x60] sm:$0xff] }
 0x56b   :  { %1257 = vmatpush.bf16.msrb.mxu1 %v2650_v29  ;;  %1233 = vmatpush.bf16.msrb.mxu0 %v2647_v32  ;;  %v2713_v29 = vld [vmem:[%s3517_s9 + $0x6] ss:$0 sm:$0xff] }
 0x56c   :  { %v958_v35 = vpack.c.bf16 %v952_v34, %v951_v33 }
 0x56d   :  { %1205 = vmatpush.bf16.msra.mxu3 %v2645_v26  ;;  %v2711_v26 = vld [vmem:[%s3517_s9 + $0x4] ss:$0 sm:$0xff] }
 0x56e   :  { %2324 = vmatmul.msk.bf16.vlgmr.msra.gmra.mxu0 %vm82_vm0, %v958_v35  ;;  %v2652_v35 = vld [vmem:[%s3513_s5 + $0x48] sm:$0xff] }
 0x56f   :  { %1316 = vmatpush.bf16.msrb.mxu2 %v2652_v35 }
 0x571   :  { %1341 = vmatpush.bf16.msrb.mxu3 %v2654_v36 }
 0x573   :  { %1317 = vmatpush.bf16.msrb.mxu2 %v2651_v39  ;;  %v2708_v39 = vld [vmem:[%s3518_s7 + $0x5] ss:$0 sm:$0xff] }
 0x575   :  { %1342 = vmatpush.bf16.msrb.mxu3 %v2653_v40 }
 0x5eb   :  { %v986_v42 = vpop.f32.mrf.mxu0 }
 0x5ec   :  { %v987_v43 = vadd.f32 %v2703_v41, %v986_v42 }
 0x5ee   :  { %v993_v44 = vmul.f32 0.044715, %v987_v43  ;;  %v991_v5 = vmul.f32 0.5, %v987_v43 }
 0x5f0   :  { %v995_v45 = vmul.f32 %v993_v44, %v987_v43 }
 0x5f2   :  { %v997_v46 = vmul.f32 %v995_v45, %v987_v43 }
 0x5f3   :  { %v988_v47 = vpop.f32.mrf.mxu0 }
 0x5f4   :  { %v999_v48 = vadd.f32 %v997_v46, %v987_v43  ;;  %v989_v49 = vadd.f32 %v2703_v41, %v988_v47  ;;  %v2656_v46 = vld [vmem:[%s3513_s5 + $0x68] sm:$0xff]  ;;  %v2658_v47 = vld [vmem:[%s3513_s5 + $0x78] sm:$0xff] }
 0x5f5   :  { %1366 = vmatpush.bf16.msra.mxu0 %v2656_v46 }
 0x5f6   :  { %v994_v50 = vmul.f32 0.044715, %v989_v49  ;;  %v1001_v51 = vmul.f32 0.7978846, %v999_v48  ;;  %v992_v60 = vmul.f32 0.5, %v989_v49 }
 0x5f8   :  { %v996_v52 = vmul.f32 %v994_v50, %v989_v49  ;;  %2754 = vtanh.f32 %v1001_v51  ;;  %v2657_v50 = vld [vmem:[%s3513_s5 + $0x70] sm:$0xff] }
 0x5fa   :  { %v998_v53 = vmul.f32 %v996_v52, %v989_v49 }
 0x5fc   :  { %v1000_v54 = vadd.f32 %v998_v53, %v989_v49  ;;  %v2655_v49 = vld [vmem:[%s3513_s5 + $0x60] sm:$0xff] }
 0x5fd   :  { %1367 = vmatpush.bf16.msra.mxu0 %v2655_v49 }
 0x5fe   :  { %v1002_v55 = vmul.f32 0.7978846, %v1000_v54  ;;  %v2755_v56 = vpop.eup %2754 }
 0x5ff   :  { %v1005_v57 = vadd.f32 1.0, %v2755_v56 }
 0x600   :  { %2756 = vtanh.f32 %v1002_v55  ;;  %v2705_v55 = vld [vmem:[%s3488_s18] ss:$0 sm:$0xff] }
 0x601   :  { %v1007_v62 = vmul.f32 %v1005_v57, %v991_v5 }
 0x606   :  { %v2757_v58 = vpop.eup %2756 }
 0x607   :  { %v1006_v61 = vadd.f32 1.0, %v2757_v58  ;;  %v2706_v58 = vld [vmem:[%s3489_s19] ss:$0 sm:$0xff] }
 0x609   :  { %v1008_v63 = vmul.f32 %v1006_v61, %v992_v60 }
 0x60b   :  { %v1018_v0 = vpack.c.bf16 %v1008_v63, %v1007_v62 }
 0x60d   :  { %2341 = vmatmul.msk.bf16.vlgmr.msra.gmra.mxu1 %vm1046_vm2, %v1018_v0 }
 0x68a   :  { %v1059_v1 = vpop.f32.mrf.mxu1 }
 0x68b   :  { %v1060_v2 = vadd.f32 %v2704_v59, %v1059_v1  ;;  %v2662_v1 = vld [vmem:[%s3516_s3 + $0x58] sm:$0xff] }
 0x68d   :  { %v1064_v3 = vadd.f32 %v1060_v2, %v951_v33  ;;  %v2649_v33 = vld [vmem:[%s3512_s0 + $0x70] sm:$0xff] }
 0x68e   :  { %1258 = vmatpush.bf16.msrb.mxu1 %v2649_v33 }
 0x68f   :  { %v1068_v4 = vsel %vm82_vm0, %v1064_v3, 0.0 }
 0x690   :  { %1069 = vadd.xlane.f32.xlu1 %v1068_v4 }
 0x692   :  { %v1061_v6 = vpop.f32.mrf.mxu1  ;;  %1391 = vmatpush.bf16.msra.mxu1 %v2658_v47 }
 0x693   :  { %v1062_v7 = vadd.f32 %v2704_v59, %v1061_v6  ;;  %v2660_v59 = vld [vmem:[%s3516_s3 + $0x48] sm:$0xff]  ;;  %v2659_v6 = vld [vmem:[%s3516_s3 + $0x40] sm:$0xff] }
 0x695   :  { %v1065_v8 = vadd.f32 %v1062_v7, %v952_v34  ;;  %v2661_v7 = vld [vmem:[%s3516_s3 + $0x50] sm:$0xff] }
 0x696   :  { %1392 = vmatpush.bf16.msra.mxu1 %v2657_v50 }
 0x697   :  { %v1071_v9 = vsel %vm82_vm0, %v1065_v8, 0.0 }
 0x698   :  { %1072 = vadd.xlane.f32.xlu2 %v1071_v9 }
 0x703   :  { %v1070_v11 = vpop.xlane.xlu1 %1069 }
 0x704   :  { %v1074_v12 = vmul.f32 %v1070_v11, %v2928_v10  ;;  %v2664_v11 = vld [vmem:[%s3516_s3 + $0x68] sm:$0xff] }
 0x706   :  { %v3192_v13 = vsub.f32 %v1064_v3, %v1074_v12  ;;  %v2666_v12 = vld [vmem:[%s3516_s3 + $0x78] sm:$0xff] }
 0x708   :  { %v1078_v14 = vmul.f32 %v3192_v13, %v3192_v13 }
 0x70a   :  { %v1080_v15 = vsel %vm82_vm0, %v1078_v14, 0.0  ;;  %v2663_v14 = vld [vmem:[%s3516_s3 + $0x60] sm:$0xff] }
 0x70b   :  { %v1073_v16 = vpop.xlane.xlu2 %1072  ;;  %1081 = vadd.xlane.f32.xlu0 %v1080_v15  ;;  %v2665_v15 = vld [vmem:[%s3516_s3 + $0x70] sm:$0xff] }
 0x70c   :  { %v1075_v17 = vmul.f32 %v1073_v16, %v2928_v10 }
 0x70e   :  { %v3198_v18 = vsub.f32 %v1065_v8, %v1075_v17 }
 0x710   :  { %v1079_v21 = vmul.f32 %v3198_v18, %v3198_v18 }
 0x712   :  { %v1083_v22 = vsel %vm82_vm0, %v1079_v21, 0.0 }
 0x713   :  { %1084 = vadd.xlane.f32.xlu1 %v1083_v22 }
 0x77e   :  { %v1082_v30 = vpop.xlane.xlu0 %1081 }
 0x77f   :  { %v1086_v31 = vmul.f32 %v1082_v30, %v2928_v10  ;;  %v2714_v30 = vld [vmem:[%s3517_s9 + $0x7] ss:$0 sm:$0xff] }
 0x781   :  { %v1088_v34 = vadd.f32 1e-12, %v1086_v31 }
 0x783   :  { %2758 = vrsqrt.f32 %v1088_v34  ;;  %vm1096_vm4 = vweird.f32 %v1088_v34 }
 0x786   :  { %v1085_v37 = vpop.xlane.xlu1 %1084 }
 0x787   :  { %v1087_v41 = vmul.f32 %v1085_v37, %v2928_v10  ;;  %v2707_v37 = vld [vmem:[%s3518_s7 + $0x4] ss:$0 sm:$0xff] }
 0x789   :  { %v2759_v42 = vpop.eup %2758  ;;  %v1089_v43 = vadd.f32 1e-12, %v1087_v41 }
 0x78a   :  { %v1091_v44 = vmul.f32 %v2759_v42, %v1088_v34  ;;  %vm1097_vm3 = vweird.f32 %v2759_v42 }
 0x78b   :  { %2760 = vrsqrt.f32 %v1089_v43  ;;  %vm1098_vm5 = vmor %vm1096_vm4, %vm1097_vm3  ;;  %vm1106_vm7 = vweird.f32 %v1089_v43 }
 0x78c   :  { %v1092_v45 = vmul.f32 %v2759_v42, %v1091_v44  ;;  %v2709_v44 = vld [vmem:[%s3518_s7 + $0x6] ss:$0 sm:$0xff] }
 0x78e   :  { %v1093_v48 = vmul.f32 0.5, %v1092_v45  ;;  %v2710_v45 = vld [vmem:[%s3518_s7 + $0x7] ss:$0 sm:$0xff] }
 0x790   :  { %v1094_v51 = vsub.f32 1.5, %v1093_v48 }
 0x791   :  { %v2761_v52 = vpop.eup %2760 }
 0x792   :  { %v1095_v53 = vmul.f32 %v2759_v42, %v1094_v51  ;;  %v1101_v54 = vmul.f32 %v2761_v52, %v1089_v43  ;;  %vm1107_vm6 = vweird.f32 %v2761_v52 }
 0x793   :  { %vm1108_vm11 = vmor %vm1106_vm7, %vm1107_vm6 }
 0x794   :  { %v1099_v56 = vsel %vm1098_vm5, %v2759_v42, %v1095_v53  ;;  %v1102_v57 = vmul.f32 %v2761_v52, %v1101_v54 }
 0x795   :  { %v1110_v5 = vmul.f32 %v1099_v56, %v3192_v13 }
 0x796   :  { %v1103_v60 = vmul.f32 0.5, %v1102_v57 }
 0x797   :  { %v1115_v61 = vmul.f32 %v2705_v55, %v1110_v5 }
 0x798   :  { %v1104_v62 = vsub.f32 1.5, %v1103_v60 }
 0x799   :  { %v3260_v63 = vadd.f32 %v2706_v58, %v1115_v61 }
 0x79a   :  { %v1105_v0 = vmul.f32 %v2761_v52, %v1104_v62 }
 0x79b   :  { %v1122_v2 = vpack.c.bf16 %v3260_v63, %v3260_v63 }
 0x79c   :  { %v1109_v3 = vsel %vm1108_vm11, %v2761_v52, %v1105_v0 }
 0x79d   :  { %v1111_v4 = vmul.f32 %v1109_v3, %v3198_v18  ;;  %2370 = vmatmul.msk.bf16.vlgmr.msra.gmra.mxu2 %vm82_vm0, %v1122_v2  ;;  %2379 = vmatmul.msk.bf16.vlgmr.msra.gmra.mxu3 %vm82_vm0, %v1122_v2  ;;  %v2718_v3 = vld [vmem:[%s3519_s8 + $0x7] ss:$0 sm:$0xff] }
 0x79e   :  { %1450 = vmatpush.bf16.msra.mxu2 %v2660_v59  ;;  %1475 = vmatpush.bf16.msra.mxu3 %v2662_v1  ;;  %v2715_v59 = vld [vmem:[%s3519_s8 + $0x4] ss:$0 sm:$0xff]  ;;  %v2716_v1 = vld [vmem:[%s3519_s8 + $0x5] ss:$0 sm:$0xff] }
 0x79f   :  { %v1116_v8 = vmul.f32 %v2705_v55, %v1111_v4 }
 0x7a1   :  { %v3279_v9 = vadd.f32 %v2706_v58, %v1116_v8 }
 0x7a2   :  { %1451 = vmatpush.bf16.msra.mxu2 %v2659_v6  ;;  %1476 = vmatpush.bf16.msra.mxu3 %v2661_v7 }
 0x7a3   :  { %v1123_v13 = vpack.c.bf16 %v3279_v9, %v3279_v9 }
 0x7a5   :  { %2388 = vmatmul.msk.bf16.vlgmr.msrb.gmra.mxu0 %vm82_vm0, %v1123_v13  ;;  %2397 = vmatmul.msk.bf16.vlgmr.msrb.gmra.mxu1 %vm82_vm0, %v1123_v13 }
 0x7a6   :  { %1500 = vmatpush.bf16.msrb.mxu0 %v2664_v11  ;;  %1525 = vmatpush.bf16.msrb.mxu1 %v2666_v12 }
 0x7aa   :  { %1501 = vmatpush.bf16.msrb.mxu0 %v2663_v14  ;;  %1526 = vmatpush.bf16.msrb.mxu1 %v2665_v15 }
 0x7ad   :  { %2426 = vmatmul.msk.bf16.vlgmr.msrb.gmra.mxu2 %vm82_vm0, %v1122_v2  ;;  %2435 = vmatmul.msk.bf16.vlgmr.msrb.gmra.mxu3 %vm82_vm0, %v1122_v2 }
 0x7b5   :  { %2444 = vmatmul.msk.bf16.vlgmr.msra.gmra.mxu0 %vm82_vm0, %v1123_v13  ;;  %2453 = vmatmul.msk.bf16.vlgmr.msra.gmra.mxu1 %vm82_vm0, %v1123_v13 }
 0x7bd   :  { %2482 = vmatmul.msk.bf16.vlgmr.msra.gmra.mxu2 %vm82_vm0, %v1122_v2  ;;  %2491 = vmatmul.msk.bf16.vlgmr.msra.gmra.mxu3 %vm82_vm0, %v1122_v2  ;;  %v2717_v2 = vld [vmem:[%s3519_s8 + $0x6] ss:$0 sm:$0xff] }
 0x7c5   :  { %2500 = vmatmul.msk.bf16.vlgmr.msrb.gmra.mxu0 %vm82_vm0, %v1123_v13  ;;  %2509 = vmatmul.msk.bf16.vlgmr.msrb.gmra.mxu1 %vm82_vm0, %v1123_v13 }
 0x820   :  { %v1182_v16 = vpop.f32.mrf.mxu2  ;;  %v1207_v17 = vpop.f32.mrf.mxu3 }
 0x821   :  { %v1183_v50 = vadd.f32 %v2707_v37, %v1182_v16  ;;  %v1208_v51 = vadd.f32 %v2708_v39, %v1207_v17 }
 0x822   :  { %v1235_v18 = vpop.f32.mrf.mxu0  ;;  %v1260_v21 = vpop.f32.mrf.mxu1 }
 0x823   :  { %v1236_v56 = vadd.f32 %v2709_v44, %v1235_v18  ;;  %v1261_v57 = vadd.f32 %v2710_v45, %v1260_v21  ;;  %v1532_v60 = vpack.c.bf16 %v1183_v50, %v1183_v50  ;;  %v1533_v61 = vpack.c.bf16 %v1208_v51, %v1208_v51 }
 0x825   :  { %v1534_v62 = vpack.c.bf16 %v1236_v56, %v1236_v56  ;;  %v1535_v0 = vpack.c.bf16 %v1261_v57, %v1261_v57 }
 0x828   :  { %v1184_v22 = vpop.f32.mrf.mxu2  ;;  %v1209_v23 = vpop.f32.mrf.mxu3 }
 0x82a   :  { %v1237_v24 = vpop.f32.mrf.mxu0  ;;  %v1262_v25 = vpop.f32.mrf.mxu1 }
 0x830   :  { %v1319_v31 = vpop.f32.mrf.mxu2  ;;  %v1344_v32 = vpop.f32.mrf.mxu3 }
 0x831   :  { %v1320_v33 = vadd.f32 %v2711_v26, %v1319_v31  ;;  %v1345_v34 = vadd.f32 %v2712_v28, %v1344_v32 }
 0x832   :  { %v1369_v35 = vpop.f32.mrf.mxu0  ;;  %v1394_v36 = vpop.f32.mrf.mxu1 }
 0x833   :  { %v1536_v40 = vpack.c.bf16 %v1320_v33, %v1320_v33  ;;  %v1537_v41 = vpack.c.bf16 %v1345_v34, %v1345_v34  ;;  %v1370_v42 = vadd.f32 %v2713_v29, %v1369_v35  ;;  %v1395_v43 = vadd.f32 %v2714_v30, %v1394_v36 }
 0x835   :  { %v1544_v46 = vsel %vm560_vm8, %v1536_v40, 0  ;;  %v1563_v47 = vsel %vm560_vm8, %v1537_v41, 0  ;;  %v1538_v48 = vpack.c.bf16 %v1370_v42, %v1370_v42  ;;  %v1539_v49 = vpack.c.bf16 %v1395_v43, %v1395_v43 }
 0x836   :  { %1553 = vmatpush.bf16.xpose.msrb.mxu2 %v1544_v46  ;;  %1572 = vmatpush.bf16.xpose.msrb.mxu3 %v1563_v47 }
 0x837   :  { %v1582_v52 = vsel %vm560_vm8, %v1538_v48, 0  ;;  %v1601_v53 = vsel %vm560_vm8, %v1539_v49, 0 }
 0x838   :  { %v1321_v54 = vpop.f32.mrf.mxu2  ;;  %v1346_v55 = vpop.f32.mrf.mxu3  ;;  %1591 = vmatpush.bf16.xpose.msra.mxu0 %v1582_v52  ;;  %1610 = vmatpush.bf16.xpose.msra.mxu1 %v1601_v53 }
 0x83a   :  { %v1371_v58 = vpop.f32.mrf.mxu0  ;;  %v1396_v5 = vpop.f32.mrf.mxu1 }
 0x83d   :  { %2510 = vmatmul.msk.bf16.vlgmr.msrb.gmra.mxu2 %vm560_vm8, %v1532_v60  ;;  %2511 = vmatmul.msk.bf16.vlgmr.msrb.gmra.mxu3 %vm560_vm8, %v1533_v61 }
 0x83f   :  { %2512 = vmatmul.msk.bf16.vlgmr.msra.gmra.mxu0 %vm560_vm8, %v1534_v62  ;;  %2513 = vmatmul.msk.bf16.vlgmr.msra.gmra.mxu1 %vm560_vm8, %v1535_v0 }
 0x840   :  { %v1453_v4 = vpop.f32.mrf.mxu2  ;;  %v1478_v6 = vpop.f32.mrf.mxu3 }
 0x841   :  { %v1454_v7 = vadd.f32 %v2715_v59, %v1453_v4  ;;  %v1479_v8 = vadd.f32 %v2716_v1, %v1478_v6 }
 0x842   :  { %v1503_v11 = vpop.f32.mrf.mxu0  ;;  %v1528_v12 = vpop.f32.mrf.mxu1 }
 0x843   :  { %v1672_v13 = vpack.c.bf16 %v1454_v7, %v1454_v7  ;;  %v1673_v14 = vpack.c.bf16 %v1479_v8, %v1479_v8  ;;  %v1504_v15 = vadd.f32 %v2717_v2, %v1503_v11  ;;  %v1529_v16 = vadd.f32 %v2718_v3, %v1528_v12 }
 0x845   :  { %v1680_v17 = vsel %vm713_vm9, %v1672_v13, 0  ;;  %v1699_v18 = vsel %vm713_vm9, %v1673_v14, 0  ;;  %v1674_v21 = vpack.c.bf16 %v1504_v15, %v1504_v15  ;;  %v1675_v22 = vpack.c.bf16 %v1529_v16, %v1529_v16 }
 0x846   :  { %1689 = vmatpush.bf16.msra.mxu2 %v1680_v17  ;;  %1708 = vmatpush.bf16.msra.mxu3 %v1699_v18 }
 0x847   :  { %v1718_v23 = vsel %vm713_vm9, %v1674_v21, 0  ;;  %v1737_v24 = vsel %vm713_vm9, %v1675_v22, 0 }
 0x848   :  { %v1455_v25 = vpop.f32.mrf.mxu2  ;;  %v1480_v26 = vpop.f32.mrf.mxu3  ;;  %1727 = vmatpush.bf16.msrb.mxu0 %v1718_v23  ;;  %1746 = vmatpush.bf16.msrb.mxu1 %v1737_v24  ;;  %v2669_v24 = vld [vmem:[%s3480_s10 + $0x30] sm:$0xff] }
 0x849   :  { %v2667_v25 = vld [vmem:[%s3480_s10 + $0x20] sm:$0xff]  ;;  %v2668_v26 = vld [vmem:[%s3480_s10 + $0x28] sm:$0xff] }
 0x84a   :  { %v1505_v28 = vpop.f32.mrf.mxu0  ;;  %v1530_v29 = vpop.f32.mrf.mxu1  ;;  %1781 = vmatpush.bf16.msrb.mxu2 %v2667_v25  ;;  %1803 = vmatpush.bf16.msrb.mxu3 %v2668_v26 }
 0x84b   :  { %v2670_v28 = vld [vmem:[%s3480_s10 + $0x38] sm:$0xff] }
 0x84c   :  { %1825 = vmatpush.bf16.msra.mxu0 %v2669_v24  ;;  %1847 = vmatpush.bf16.msra.mxu1 %v2670_v28  ;;  %v2720_v24 = vld [vmem:[%s3482_s12 + $0x1] ss:$0 sm:$0xff] }
 0x8bc   :  { %v1593_v30 = vpop.f32.mrf.mxu0  ;;  %v1612_v31 = vpop.f32.mrf.mxu1 }
 0x8bd   :  { %v1618_v32 = vmul.f32 0.25, %v1593_v30  ;;  %v1619_v44 = vmul.f32 0.25, %v1612_v31 }
 0x8bf   :  { %v1622_v33 = vadd.f32 %v3107_v27, %v1618_v32  ;;  %v1623_v48 = vadd.f32 %v3116_v38, %v1619_v44  ;;  %v2719_v44 = vld [vmem:[%s3481_s11 + $0x1] ss:$0 sm:$0xff] }
 0x8c0   :  { %v1555_v34 = vpop.f32.mrf.mxu2  ;;  %v1574_v35 = vpop.f32.mrf.mxu3 }
 0x8c1   :  { %v1616_v36 = vmul.f32 0.25, %v1555_v34  ;;  %v1617_v37 = vmul.f32 0.25, %v1574_v35  ;;  %v1630_v39 = vsel %vm657_vm10, %v1622_v33, -inf  ;;  %v1633_v49 = vsel %vm657_vm10, %v1623_v48, -inf }
 0x8c2   :  { %1631 = vmax.xlane.f32.xlu1 %v1630_v39 }
 0x8c3   :  { %v1621_v40 = vadd.f32 %v3095_v19, %v1617_v37  ;;  %v1620_v41 = vadd.f32 %v3100_v20, %v1616_v36 }
 0x8c4   :  { %v1595_v42 = vpop.f32.mrf.mxu0  ;;  %v1614_v43 = vpop.f32.mrf.mxu1 }
 0x8c5   :  { %v1627_v45 = vsel %vm657_vm10, %v1621_v40, -inf  ;;  %v1624_v46 = vsel %vm657_vm10, %v1620_v41, -inf }
 0x8c6   :  { %1628 = vmax.xlane.f32.xlu0 %v1627_v45  ;;  %1625 = vmax.xlane.f32.xlu2 %v1624_v46 }
 0x8c8   :  { %v1557_v27 = vpop.f32.mrf.mxu2  ;;  %v1576_v47 = vpop.f32.mrf.mxu3 }
 0x8ce   :  { %1634 = vmax.xlane.f32.xlu2 %v1633_v49 }
 0x935   :  { %v1632_v50 = vpop.xlane.xlu1 %1631 }
 0x936   :  { %v1638_v19 = vsub.f32 %v1622_v33, %v1632_v50 }
 0x938   :  { %v1644_v51 = vmul.f32 1.442695, %v1638_v19 }
 0x939   :  { %v1629_v20 = vpop.xlane.xlu0 %1628  ;;  %v1626_v52 = vpop.xlane.xlu2 %1625 }
 0x93a   :  { %2762 = vpow2.f32 %v1644_v51  ;;  %v1637_v53 = vsub.f32 %v1621_v40, %v1629_v20  ;;  %v1636_v54 = vsub.f32 %v1620_v41, %v1626_v52 }
 0x93c   :  { %v1642_v55 = vmul.f32 1.442695, %v1637_v53  ;;  %v1640_v56 = vmul.f32 1.442695, %v1636_v54 }
 0x93e   :  { %2764 = vpow2.f32 %v1642_v55 }
 0x93f   :  { %2766 = vpow2.f32 %v1640_v56 }
 0x940   :  { %v2763_v57 = vpop.eup %2762 }
 0x941   :  { %v1635_v58 = vpop.xlane.xlu2 %1634  ;;  %v1654_v5 = vsel %vm657_vm10, %v2763_v57, 0.0 }
 0x942   :  { %v1639_v38 = vsub.f32 %v1623_v48, %v1635_v58  ;;  %1655 = vadd.xlane.f32.xlu2 %v1654_v5 }
 0x944   :  { %v2765_v60 = vpop.eup %2764  ;;  %v1646_v61 = vmul.f32 1.442695, %v1639_v38 }
 0x945   :  { %v2767_v62 = vpop.eup %2766  ;;  %v1651_v0 = vsel %vm657_vm10, %v2765_v60, 0.0 }
 0x946   :  { %2768 = vpow2.f32 %v1646_v61  ;;  %v1648_v59 = vsel %vm657_vm10, %v2767_v62, 0.0  ;;  %1652 = vadd.xlane.f32.xlu1 %v1651_v0  ;;  %v2672_v0 = vld [vmem:[%s3485_s14 + $0x18] sm:$0xff] }
 0x947   :  { %1649 = vadd.xlane.f32.xlu0 %v1648_v59  ;;  %v2671_v59 = vld [vmem:[%s3485_s14 + $0x10] sm:$0xff] }
 0x94c   :  { %v2769_v1 = vpop.eup %2768 }
 0x94d   :  { %v1657_v2 = vsel %vm657_vm10, %v2769_v1, 0.0 }
 0x94f   :  { %1658 = vadd.xlane.f32.xlu0 %v1657_v2 }
 0x9b5   :  { %v1656_v3 = vpop.xlane.xlu2 %1655 }
 0x9b6   :  { %2770 = vrcp.f32 %v1656_v3 }
 0x9b9   :  { %v1653_v4 = vpop.xlane.xlu1 %1652 }
 0x9ba   :  { %v1650_v6 = vpop.xlane.xlu0 %1649  ;;  %2772 = vrcp.f32 %v1653_v4 }
 0x9bb   :  { %2774 = vrcp.f32 %v1650_v6 }
 0x9bc   :  { %v2771_v7 = vpop.eup %2770 }
 0x9bd   :  { %v1666_v8 = vmul.f32 %v2771_v7, %v2763_v57 }
 0x9bf   :  { %v1670_v11 = vpack.c.bf16 %v1666_v8, %v1666_v8 }
 0x9c0   :  { %v2773_v12 = vpop.eup %2772 }
 0x9c1   :  { %v2775_v13 = vpop.eup %2774  ;;  %v1665_v14 = vmul.f32 %v2773_v12, %v2765_v60  ;;  %2516 = vmatmul.msk.bf16.vlgmr.msrb.gmra.mxu0 %vm657_vm10, %v1670_v11 }
 0x9c2   :  { %v1664_v15 = vmul.f32 %v2775_v13, %v2767_v62  ;;  %v1659_v16 = vpop.xlane.xlu0 %1658 }
 0x9c3   :  { %v1669_v17 = vpack.c.bf16 %v1665_v14, %v1665_v14  ;;  %2776 = vrcp.f32 %v1659_v16 }
 0x9c4   :  { %v1668_v18 = vpack.c.bf16 %v1664_v15, %v1664_v15 }
 0x9c5   :  { %2515 = vmatmul.msk.bf16.vlgmr.msra.gmra.mxu3 %vm657_vm10, %v1669_v17 }
 0x9c6   :  { %2514 = vmatmul.msk.bf16.vlgmr.msra.gmra.mxu2 %vm657_vm10, %v1668_v18 }
 0x9c7   :  { %1954 = vmatpush.bf16.msra.mxu2 %v2672_v0 }
 0x9c9   :  { %v2777_v21 = vpop.eup %2776 }
 0x9ca   :  { %v1667_v22 = vmul.f32 %v2777_v21, %v2769_v1 }
 0x9cb   :  { %1955 = vmatpush.bf16.msra.mxu2 %v2671_v59 }
 0x9cc   :  { %v1671_v23 = vpack.c.bf16 %v1667_v22, %v1667_v22 }
 0x9ce   :  { %2517 = vmatmul.msk.bf16.vlgmr.msrb.gmra.mxu1 %vm657_vm10, %v1671_v23 }
 0xa3e   :  { %v1729_v29 = vpop.f32.mrf.mxu0 }
 0xa3f   :  { %v1754_v30 = vpack.c.bf16 %v1729_v29, %v1729_v29  ;;  %v2721_v29 = vld [vmem:[%s3483_s13 + $0x1] ss:$0 sm:$0xff] }
 0xa41   :  { %2540 = vmatmul.msk.bf16.vlgmr.msra.gmra.mxu0 %vm560_vm8, %v1754_v30 }
 0xa46   :  { %v1731_v31 = vpop.f32.mrf.mxu0 }
 0xa48   :  { %v1710_v32 = vpop.f32.mrf.mxu3 }
 0xa49   :  { %v1691_v33 = vpop.f32.mrf.mxu2  ;;  %v1753_v34 = vpack.c.bf16 %v1710_v32, %v1710_v32 }
 0xa4a   :  { %v1752_v35 = vpack.c.bf16 %v1691_v33, %v1691_v33 }
 0xa4b   :  { %v1748_v36 = vpop.f32.mrf.mxu1  ;;  %2535 = vmatmul.msk.bf16.vlgmr.msrb.gmra.mxu3 %vm560_vm8, %v1753_v34 }
 0xa4c   :  { %v1755_v37 = vpack.c.bf16 %v1748_v36, %v1748_v36  ;;  %2530 = vmatmul.msk.bf16.vlgmr.msrb.gmra.mxu2 %vm560_vm8, %v1752_v35  ;;  %v2676_v36 = vld [vmem:[%s3487_s16 + $0x38] sm:$0xff] }
 0xa4d   :  { %2026 = vmatpush.bf16.msra.mxu3 %v2676_v36 }
 0xa4e   :  { %2545 = vmatmul.msk.bf16.vlgmr.msra.gmra.mxu1 %vm560_vm8, %v1755_v37  ;;  %v2675_v37 = vld [vmem:[%s3487_s16 + $0x30] sm:$0xff] }
 0xa50   :  { %v1712_v39 = vpop.f32.mrf.mxu3 }
 0xa51   :  { %v1693_v40 = vpop.f32.mrf.mxu2  ;;  %2027 = vmatpush.bf16.msra.mxu3 %v2675_v37  ;;  %v2674_v39 = vld [vmem:[%s3487_s16 + $0x28] sm:$0xff] }
 0xa52   :  { %v2722_v40 = vld [vmem:[%s3484_s15 + $0x1] ss:$0 sm:$0xff] }
 0xa53   :  { %v1750_v41 = vpop.f32.mrf.mxu1 }
 0xa54   :  { %v2673_v41 = vld [vmem:[%s3487_s16 + $0x20] sm:$0xff] }
 0xa55   :  { %2028 = vmatpush.bf16.msra.mxu3 %v2674_v39 }
 0xa59   :  { %2029 = vmatpush.bf16.msra.mxu3 %v2673_v41 }
 0xabe   :  { %v1827_v42 = vpop.f32.mrf.mxu0 }
 0xac6   :  { %v1829_v43 = vpop.f32.mrf.mxu0 }
 0xacb   :  { %v1849_v45 = vpop.f32.mrf.mxu1 }
 0xacc   :  { %v1854_v46 = vadd.f32 %v1849_v45, %v1827_v42 }
 0xace   :  { %v1861_v27 = vadd.f32 %v2719_v44, %v1854_v46  ;;  %v1805_v47 = vpop.f32.mrf.mxu3 }
 0xacf   :  { %v1783_v48 = vpop.f32.mrf.mxu2 }
 0xad0   :  { %v1853_v49 = vadd.f32 %v1805_v47, %v1783_v48  ;;  %v1863_v50 = vadd.f32 %v1861_v27, %v3279_v9 }
 0xad2   :  { %v1860_v19 = vadd.f32 %v2719_v44, %v1853_v49  ;;  %v1871_v51 = vsel %vm82_vm0, %v1863_v50, 0.0 }
 0xad3   :  { %v1851_v20 = vpop.f32.mrf.mxu1  ;;  %1872 = vadd.xlane.f32.xlu2 %v1871_v51 }
 0xad4   :  { %v1862_v52 = vadd.f32 %v1860_v19, %v3260_v63 }
 0xad6   :  { %v1868_v53 = vsel %vm82_vm0, %v1862_v52, 0.0  ;;  %v1807_v54 = vpop.f32.mrf.mxu3 }
 0xad7   :  { %v1785_v55 = vpop.f32.mrf.mxu2  ;;  %1869 = vadd.xlane.f32.xlu1 %v1868_v53 }
 0xb46   :  { %v1873_v56 = vpop.xlane.xlu2 %1872 }
 0xb47   :  { %v1875_v57 = vmul.f32 %v1873_v56, %v2928_v10 }
 0xb49   :  { %v1877_v58 = vsub.f32 %v1863_v50, %v1875_v57 }
 0xb4a   :  { %v1870_v5 = vpop.xlane.xlu1 %1869 }
 0xb4b   :  { %v1874_v38 = vmul.f32 %v1870_v5, %v2928_v10  ;;  %v1879_v9 = vmul.f32 %v1877_v58, %v1877_v58 }
 0xb4d   :  { %v1876_v60 = vsub.f32 %v1862_v52, %v1874_v38  ;;  %v1883_v61 = vsel %vm82_vm0, %v1879_v9, 0.0 }
 0xb4e   :  { %1884 = vadd.xlane.f32.xlu1 %v1883_v61 }
 0xb4f   :  { %v1878_v62 = vmul.f32 %v1876_v60, %v1876_v60 }
 0xb51   :  { %v1880_v63 = vsel %vm82_vm0, %v1878_v62, 0.0 }
 0xb52   :  { %1881 = vadd.xlane.f32.xlu0 %v1880_v63 }
 0xbc1   :  { %v1885_v1 = vpop.xlane.xlu1 %1884 }
 0xbc2   :  { %v1887_v2 = vmul.f32 %v1885_v1, %v2928_v10 }
 0xbc4   :  { %v1889_v3 = vadd.f32 1e-12, %v1887_v2 }
 0xbc5   :  { %v1882_v4 = vpop.xlane.xlu0 %1881 }
 0xbc6   :  { %2778 = vrsqrt.f32 %v1889_v3  ;;  %v1886_v6 = vmul.f32 %v1882_v4, %v2928_v10  ;;  %vm1906_vm9 = vweird.f32 %v1889_v3 }
 0xbc8   :  { %v1888_v7 = vadd.f32 1e-12, %v1886_v6 }
 0xbca   :  { %2780 = vrsqrt.f32 %v1888_v7  ;;  %vm1896_vm13 = vweird.f32 %v1888_v7 }
 0xbcc   :  { %v2779_v8 = vpop.eup %2778 }
 0xbcd   :  { %v1901_v11 = vmul.f32 %v2779_v8, %v1889_v3  ;;  %vm1907_vm8 = vweird.f32 %v2779_v8 }
 0xbce   :  { %vm1908_vm10 = vmor %vm1906_vm9, %vm1907_vm8 }
 0xbcf   :  { %v1902_v12 = vmul.f32 %v2779_v8, %v1901_v11 }
 0xbd0   :  { %v2781_v13 = vpop.eup %2780 }
 0xbd1   :  { %v1903_v14 = vmul.f32 0.5, %v1902_v12  ;;  %v1891_v15 = vmul.f32 %v2781_v13, %v1888_v7  ;;  %vm1897_vm12 = vweird.f32 %v2781_v13 }
 0xbd2   :  { %vm1898_vm14 = vmor %vm1896_vm13, %vm1897_vm12 }
 0xbd3   :  { %v1904_v16 = vsub.f32 1.5, %v1903_v14  ;;  %v1892_v17 = vmul.f32 %v2781_v13, %v1891_v15 }
 0xbd5   :  { %v1905_v18 = vmul.f32 %v2779_v8, %v1904_v16  ;;  %v1893_v21 = vmul.f32 0.5, %v1892_v17  ;;  %v2678_v17 = vld [vmem:[%s3491_s20 + $0x8] sm:$0xff] }
 0xbd6   :  { %2126 = vmatpush.bf16.msrb.mxu0 %v2678_v17 }
 0xbd7   :  { %v1909_v22 = vsel %vm1908_vm10, %v2779_v8, %v1905_v18  ;;  %v1894_v23 = vsub.f32 1.5, %v1893_v21 }
 0xbd8   :  { %v1911_v25 = vmul.f32 %v1909_v22, %v1877_v58  ;;  %v2677_v22 = vld [vmem:[%s3491_s20] sm:$0xff] }
 0xbd9   :  { %v1895_v26 = vmul.f32 %v2781_v13, %v1894_v23 }
 0xbda   :  { %v1916_v30 = vmul.f32 %v2720_v24, %v1911_v25  ;;  %2127 = vmatpush.bf16.msrb.mxu0 %v2677_v22 }
 0xbdb   :  { %v1899_v28 = vsel %vm1898_vm14, %v2781_v13, %v1895_v26 }
 0xbdc   :  { %v1910_v31 = vmul.f32 %v1899_v28, %v1876_v60  ;;  %v1921_v33 = vadd.f32 %v2721_v29, %v1916_v30  ;;  %v2723_v60 = vld [vmem:[%s3486_s17 + $0x1] ss:$0 sm:$0xff] }
 0xbde   :  { %v1915_v32 = vmul.f32 %v2720_v24, %v1910_v31 }
 0xbe0   :  { %v1920_v34 = vadd.f32 %v2721_v29, %v1915_v32 }
 0xbe2   :  { %v1929_v35 = vpack.c.bf16 %v1921_v33, %v1920_v34 }
 0xbe4   :  { %2562 = vmatmul.msk.bf16.vlgmr.msra.gmra.mxu2 %vm82_vm0, %v1929_v35 }
 0xc67   :  { %v1957_v42 = vpop.f32.mrf.mxu2 }
 0xc68   :  { %v1958_v43 = vadd.f32 %v2722_v40, %v1957_v42 }
 0xc6a   :  { %v1964_v44 = vmul.f32 0.044715, %v1958_v43  ;;  %v1962_v56 = vmul.f32 0.5, %v1958_v43 }
 0xc6c   :  { %v1966_v45 = vmul.f32 %v1964_v44, %v1958_v43  ;;  %v2725_v44 = vld [vmem:[%s3489_s19 + $0x1] ss:$0 sm:$0xff] }
 0xc6e   :  { %v1968_v46 = vmul.f32 %v1966_v45, %v1958_v43 }
 0xc6f   :  { %v1959_v27 = vpop.f32.mrf.mxu2 }
 0xc70   :  { %v1970_v47 = vadd.f32 %v1968_v46, %v1958_v43  ;;  %v1960_v48 = vadd.f32 %v2722_v40, %v1959_v27 }
 0xc72   :  { %v1965_v49 = vmul.f32 0.044715, %v1960_v48  ;;  %v1972_v50 = vmul.f32 0.7978846, %v1970_v47  ;;  %v1963_v57 = vmul.f32 0.5, %v1960_v48 }
 0xc74   :  { %v1967_v19 = vmul.f32 %v1965_v49, %v1960_v48  ;;  %2782 = vtanh.f32 %v1972_v50  ;;  %v2680_v50 = vld [vmem:[%s3493_s22 + $0x8] sm:$0xff] }
 0xc75   :  { %2166 = vmatpush.bf16.msrb.mxu1 %v2680_v50 }
 0xc76   :  { %v1969_v51 = vmul.f32 %v1967_v19, %v1960_v48  ;;  %v2679_v19 = vld [vmem:[%s3493_s22] sm:$0xff] }
 0xc78   :  { %v1971_v20 = vadd.f32 %v1969_v51, %v1960_v48 }
 0xc79   :  { %2167 = vmatpush.bf16.msrb.mxu1 %v2679_v19 }
 0xc7a   :  { %v1973_v52 = vmul.f32 0.7978846, %v1971_v20  ;;  %v2783_v53 = vpop.eup %2782  ;;  %v2726_v20 = vld [vmem:[%s3490_s21] ss:$0 sm:$0xff] }
 0xc7b   :  { %v1976_v54 = vadd.f32 1.0, %v2783_v53 }
 0xc7c   :  { %2784 = vtanh.f32 %v1973_v52 }
 0xc7d   :  { %v1978_v5 = vmul.f32 %v1976_v54, %v1962_v56 }
 0xc82   :  { %v2785_v55 = vpop.eup %2784 }
 0xc83   :  { %v1977_v58 = vadd.f32 1.0, %v2785_v55 }
 0xc85   :  { %v1979_v38 = vmul.f32 %v1977_v58, %v1963_v57  ;;  %v2727_v58 = vld [vmem:[%s3492_s23] ss:$0 sm:$0xff] }
 0xc87   :  { %v1991_v9 = vpack.c.bf16 %v1979_v38, %v1978_v5 }
 0xc89   :  { %2588 = vmatmul.msk.bf16.vlgmr.msra.gmra.mxu3 %vm1046_vm2, %v1991_v9 }
 0xd0c   :  { %v2031_v61 = vpop.f32.mrf.mxu3 }
 0xd0d   :  { %v2032_v62 = vadd.f32 %v2723_v60, %v2031_v61 }
 0xd0f   :  { %v2036_v63 = vadd.f32 %v2032_v62, %v1920_v34 }
 0xd11   :  { %v2042_v0 = vsel %vm82_vm0, %v2036_v63, 0.0 }
 0xd12   :  { %2043 = vadd.xlane.f32.xlu2 %v2042_v0 }
 0xd14   :  { %v2033_v59 = vpop.f32.mrf.mxu3 }
 0xd15   :  { %v2034_v1 = vadd.f32 %v2723_v60, %v2033_v59 }
 0xd17   :  { %v2037_v2 = vadd.f32 %v2034_v1, %v1921_v33 }
 0xd19   :  { %v2045_v3 = vsel %vm82_vm0, %v2037_v2, 0.0 }
 0xd1a   :  { %2046 = vadd.xlane.f32.xlu0 %v2045_v3 }
 0xd85   :  { %v2044_v4 = vpop.xlane.xlu2 %2043 }
 0xd86   :  { %v2048_v6 = vmul.f32 %v2044_v4, %v2928_v10 }
 0xd88   :  { %v2050_v7 = vsub.f32 %v2036_v63, %v2048_v6 }
 0xd8a   :  { %v2052_v8 = vmul.f32 %v2050_v7, %v2050_v7 }
 0xd8c   :  { %v2054_v11 = vsel %vm82_vm0, %v2052_v8, 0.0 }
 0xd8d   :  { %v2047_v12 = vpop.xlane.xlu0 %2046  ;;  %2055 = vadd.xlane.f32.xlu1 %v2054_v11 }
 0xd8e   :  { %v2049_v13 = vmul.f32 %v2047_v12, %v2928_v10 }
 0xd90   :  { %v2051_v14 = vsub.f32 %v2037_v2, %v2049_v13 }
 0xd92   :  { %v2053_v15 = vmul.f32 %v2051_v14, %v2051_v14 }
 0xd94   :  { %v2057_v16 = vsel %vm82_vm0, %v2053_v15, 0.0 }
 0xd95   :  { %2058 = vadd.xlane.f32.xlu2 %v2057_v16 }
 0xe00   :  { %v2056_v18 = vpop.xlane.xlu1 %2055 }
 0xe01   :  { %v2060_v21 = vmul.f32 %v2056_v18, %v2928_v10 }
 0xe03   :  { %v2062_v23 = vadd.f32 1e-12, %v2060_v21 }
 0xe05   :  { %2786 = vrsqrt.f32 %v2062_v23  ;;  %vm2070_vm1 = vweird.f32 %v2062_v23 }
 0xe08   :  { %v2059_v24 = vpop.xlane.xlu2 %2058 }
 0xe09   :  { %v2061_v25 = vmul.f32 %v2059_v24, %v2928_v10  ;;  %v2724_v10 = vld [vmem:[%s3488_s18 + $0x1] ss:$0 sm:$0xff] }
 0xe0b   :  { %v2787_v26 = vpop.eup %2786  ;;  %v2063_v28 = vadd.f32 1e-12, %v2061_v25 }
 0xe0c   :  { %v2065_v29 = vmul.f32 %v2787_v26, %v2062_v23  ;;  %vm2071_vm15 = vweird.f32 %v2787_v26 }
 0xe0d   :  { %2788 = vrsqrt.f32 %v2063_v28  ;;  %vm2072_vm2 = vmor %vm2070_vm1, %vm2071_vm15  ;;  %vm2080_vm4 = vweird.f32 %v2063_v28 }
 0xe0e   :  { %v2066_v30 = vmul.f32 %v2787_v26, %v2065_v29 }
 0xe10   :  { %v2067_v31 = vmul.f32 0.5, %v2066_v30 }
 0xe12   :  { %v2068_v32 = vsub.f32 1.5, %v2067_v31 }
 0xe13   :  { %v2789_v33 = vpop.eup %2788 }
 0xe14   :  { %v2069_v34 = vmul.f32 %v2787_v26, %v2068_v32  ;;  %v2075_v35 = vmul.f32 %v2789_v33, %v2063_v28  ;;  %vm2081_vm3 = vweird.f32 %v2789_v33 }
 0xe15   :  { %vm2082_vm5 = vmor %vm2080_vm4, %vm2081_vm3 }
 0xe16   :  { %v2076_v36 = vmul.f32 %v2789_v33, %v2075_v35  ;;  %v2073_v37 = vsel %vm2072_vm2, %v2787_v26, %v2069_v34 }
 0xe17   :  { %v2084_v41 = vmul.f32 %v2073_v37, %v2050_v7 }
 0xe18   :  { %v2077_v39 = vmul.f32 0.5, %v2076_v36 }
 0xe19   :  { %v2089_v45 = vmul.f32 %v2724_v10, %v2084_v41 }
 0xe1a   :  { %v2078_v40 = vsub.f32 1.5, %v2077_v39 }
 0xe1b   :  { %v2094_v47 = vadd.f32 %v2725_v44, %v2089_v45 }
 0xe1c   :  { %v2079_v42 = vmul.f32 %v2789_v33, %v2078_v40 }
 0xe1e   :  { %v2083_v43 = vsel %vm2082_vm5, %v2789_v33, %v2079_v42 }
 0xe1f   :  { %v2085_v46 = vmul.f32 %v2083_v43, %v2051_v14 }
 0xe21   :  { %v2090_v27 = vmul.f32 %v2724_v10, %v2085_v46 }
 0xe23   :  { %v2095_v48 = vadd.f32 %v2725_v44, %v2090_v27 }
 0xe25   :  { %v2101_v49 = vpack.c.bf16 %v2095_v48, %v2094_v47 }
 0xe27   :  { %2599 = vmatmul.msk.bf16.vlgmr.msrb.gmra.mxu0 %vm82_vm0, %v2101_v49 }
 0xea4   :  { %v2129_v51 = vpop.f32.mrf.mxu0 }
 0xea5   :  { %v2130_v52 = vadd.f32 %v2726_v20, %v2129_v51 }
 0xea7   :  { %2790 = vtanh.f32 %v2130_v52 }
 0xeac   :  { %v2131_v53 = vpop.f32.mrf.mxu0 }
 0xead   :  { %v2132_v54 = vadd.f32 %v2726_v20, %v2131_v53  ;;  %v2791_v55 = vpop.eup %2790 }
 0xeaf   :  { %2792 = vtanh.f32 %v2132_v54 }
 0xeb5   :  { %v2793_v56 = vpop.eup %2792 }
 0xeb6   :  { %v2141_v57 = vpack.c.bf16 %v2793_v56, %v2791_v55 }
 0xeb8   :  { %2608 = vmatmul.msk.bf16.vlgmr.msrb.gmra.mxu1 %vm82_vm0, %v2141_v57 }
 0xf35   :  { %v2169_v5 = vpop.f32.mrf.mxu1 }
 0xf36   :  { %v2170_v38 = vadd.f32 %v2727_v58, %v2169_v5 }
 0xf38   :  { %2174 = vst [vmem:[%s3494_s24] sm:$0xff] %v2170_v38 }
 0xf3d   :  { %v2171_v9 = vpop.f32.mrf.mxu1 }
 0xf3e   :  { %v2172_v60 = vadd.f32 %v2727_v58, %v2171_v9 }
 0xf40   :  { %2175 = vst [vmem:[%s3494_s24 + $0x8] sm:$0xff] %v2172_v60 }

</bundles_post_ra>
